<compile_context>
chip_gen: v7x
topology: tpu7x:2x2x1
jax: 0.10.0
libtpu: 0.0.40
codegen_flags: <defaults>
</compile_context>

<pallas_src>
import functools

import jax
import jax.numpy as jnp
from jax import lax
from jax.experimental import pallas as pl
from jax.experimental.pallas import tpu as pltpu

BN_EPS = 1e-5


# ----------------------------------------------------------------------------
# Fused kernel
# ----------------------------------------------------------------------------
def _depthwise_fused_kernel(x_ref, w1_ref, p1_ref, w2_ref, p2_ref, w3_ref, p3_ref,
                            out_ref, pp_ref, *, stride, residual):
    """1x1 conv/BN/PReLU -> depthwise 3x3/BN/PReLU -> 1x1 conv/BN (+residual).

    x_ref : (1, s*s*Ho*Wo, Cin)   parity-de-interleaved, flattened input pixels
    w1_ref: (Cin, G)              pointwise conv-1 weight
    p1_ref: (3, G)                [bn scale, bn shift, prelu alpha] layer 1
    w2_ref: (9, G)                depthwise 3x3 taps, index kh*3+kw
    p2_ref: (3, G)                [bn scale, bn shift, prelu alpha] layer 2
    w3_ref: (G, Cout)             pointwise conv-3 weight
    p3_ref: (2, Cout)             [bn scale, bn shift] layer 3
    out_ref:(1, Ho, Wo, Cout)
    pp_ref: (s, s, Ho+2, Wo+2, G) VMEM scratch: zero-halo parity planes of layer-1 out
    """
    s = stride
    _, Ho, Wo, Cout = out_ref.shape
    G = w1_ref.shape[1]

    # halo must be zero; interior is fully rewritten below (cheap at these sizes)
    pp_ref[...] = jnp.zeros_like(pp_ref)

    # ---- layer 1: 1x1 conv + BN + PReLU, one MXU matmul with M = H*W ----------
    z1 = jnp.dot(x_ref[0], w1_ref[...], preferred_element_type=jnp.float32)
    z1 = z1 * p1_ref[0:1, :] + p1_ref[1:2, :]
    z1 = jnp.maximum(z1, 0.0) + p1_ref[2:3, :] * jnp.minimum(z1, 0.0)
    z1 = z1.reshape(s, s, Ho, Wo, G)
    for p in range(s):
        for q in range(s):
            pp_ref[p, q, 1:Ho + 1, 1:Wo + 1, :] = z1[p, q]

    # ---- layer 2: depthwise 3x3 + BN + PReLU (VPU; stride folded into parity) -
    w2 = w2_ref[...]                                    # (9, G)
    acc = jnp.zeros((Ho, Wo, G), jnp.float32)
    for kh in range(3):
        ph = (kh - 1) % s
        oh = 1 + (kh - 1 - ph) // s
        for kw in range(3):
            pw = (kw - 1) % s
            ow = 1 + (kw - 1 - pw) // s
            tap = pp_ref[ph, pw, oh:oh + Ho, ow:ow + Wo, :]
            k = kh * 3 + kw
            acc = acc + tap * w2[k:k + 1, :]
    z2 = acc * p2_ref[0:1, :] + p2_ref[1:2, :]
    z2 = jnp.maximum(z2, 0.0) + p2_ref[2:3, :] * jnp.minimum(z2, 0.0)

    # ---- layer 3: 1x1 conv + BN (+ optional residual), M = Ho*Wo matmul -------
    z3 = jnp.dot(z2.reshape(Ho * Wo, G), w3_ref[...],
                 preferred_element_type=jnp.float32)
    z3 = z3 * p3_ref[0:1, :] + p3_ref[1:2, :]
    if residual:                        # only when s == 1 and Cin == Cout
        z3 = z3 + x_ref[0]
    out_ref[0] = z3.reshape(Ho, Wo, Cout).astype(out_ref.dtype)


# ----------------------------------------------------------------------------
# Wrapper (layout plumbing + BN folding)
# ----------------------------------------------------------------------------
def _fold_bn(bn):
    scale = bn["gamma"] / jnp.sqrt(bn["var"] + BN_EPS)
    shift = bn["beta"] - bn["mean"] * scale
    return scale, shift


def depthwise_block(x_nchw, params, *, stride=2, residual=False):
    """Forward of DepthWise.  Input/output are NCHW float32 (like PyTorch)."""
    s = int(stride)
    assert s in (1, 2), "only stride 1 or 2 supported"
    B, Cin, H, W = x_nchw.shape
    assert H % s == 0 and W % s == 0
    G = params["w1"].shape[1]
    Cout = params["w3"].shape[1]
    if residual:
        assert s == 1 and Cin == Cout, "residual needs stride 1 and in_c == out_c"
    Ho, Wo = H // s, W // s

    # NCHW -> NHWC, then de-interleave spatial parity (space-to-depth style).
    # The 1x1 first layer is pointwise, so it commutes with this permutation;
    # inside the kernel stride-s taps become contiguous slices of parity planes.
    x = jnp.transpose(x_nchw, (0, 2, 3, 1)).astype(jnp.float32)
    xd = x.reshape(B, Ho, s, Wo, s, Cin).transpose(0, 2, 4, 1, 3, 5)
    xd = xd.reshape(B, s * s * Ho * Wo, Cin)

    sc1, sh1 = _fold_bn(params["bn1"])
    sc2, sh2 = _fold_bn(params["bn2"])
    sc3, sh3 = _fold_bn(params["bn3"])
    p1 = jnp.stack([sc1, sh1, params["alpha1"]]).astype(jnp.float32)   # (3, G)
    p2 = jnp.stack([sc2, sh2, params["alpha2"]]).astype(jnp.float32)   # (3, G)
    p3 = jnp.stack([sc3, sh3]).astype(jnp.float32)                     # (2, Cout)
    w2f = params["w2"].reshape(9, G).astype(jnp.float32)               # (9, G)

    kern = functools.partial(_depthwise_fused_kernel, stride=s, residual=residual)
    out = pl.pallas_call(
        kern,
        out_shape=jax.ShapeDtypeStruct((B, Ho, Wo, Cout), jnp.float32),
        grid=(B,),
        in_specs=[
            pl.BlockSpec((1, s * s * Ho * Wo, Cin), lambda b: (b, 0, 0)),
            pl.BlockSpec((Cin, G), lambda b: (0, 0)),
            pl.BlockSpec((3, G), lambda b: (0, 0)),
            pl.BlockSpec((9, G), lambda b: (0, 0)),
            pl.BlockSpec((3, G), lambda b: (0, 0)),
            pl.BlockSpec((G, Cout), lambda b: (0, 0)),
            pl.BlockSpec((2, Cout), lambda b: (0, 0)),
        ],
        out_specs=pl.BlockSpec((1, Ho, Wo, Cout), lambda b: (b, 0, 0, 0)),
        scratch_shapes=[pltpu.VMEM((s, s, Ho + 2, Wo + 2, G), jnp.float32)],
        compiler_params=pltpu.CompilerParams(dimension_semantics=("parallel",)),
    )(xd, params["w1"].astype(jnp.float32), p1, w2f, p2,
      params["w3"].astype(jnp.float32), p3)
    return jnp.transpose(out, (0, 3, 1, 2))     # NHWC -> NCHW


# ----------------------------------------------------------------------------
# Deterministic synthetic parameters (PyTorch shapes, inference-mode BN)
# ----------------------------------------------------------------------------
def _init_bn(key, c):
    kg, kb, km, kv = jax.random.split(key, 4)
    return dict(gamma=1.0 + 0.1 * jax.random.normal(kg, (c,), jnp.float32),
                beta=0.1 * jax.random.normal(kb, (c,), jnp.float32),
                mean=0.1 * jax.random.normal(km, (c,), jnp.float32),
                var=jax.random.uniform(kv, (c,), jnp.float32, 0.5, 1.5))


def init_params(key, in_c, out_c, groups):
    ks = jax.random.split(key, 8)
    return dict(
        w1=0.3 * jax.random.normal(ks[0], (in_c, groups), jnp.float32),
        bn1=_init_bn(ks[1], groups),
        alpha1=0.25 + 0.05 * jax.random.normal(ks[2], (groups,), jnp.float32),
        w2=0.3 * jax.random.normal(ks[3], (3, 3, groups), jnp.float32),
        bn2=_init_bn(ks[4], groups),
        alpha2=0.25 + 0.05 * jax.random.normal(ks[5], (groups,), jnp.float32),
        w3=0.3 * jax.random.normal(ks[6], (groups, out_c), jnp.float32),
        bn3=_init_bn(ks[7], out_c),
    )


# ----------------------------------------------------------------------------
# Pure-JAX reference (correctness check)
# ----------------------------------------------------------------------------
def _ref_forward(x_nchw, p, stride, residual):
    x = jnp.transpose(x_nchw, (0, 2, 3, 1)).astype(jnp.float32)

    def bn(z, q):
        return (z - q["mean"]) / jnp.sqrt(q["var"] + BN_EPS) * q["gamma"] + q["beta"]

    def prelu(z, a):
        return jnp.where(z >= 0, z, a * z)

    cin, g = p["w1"].shape
    cout = p["w3"].shape[1]
    dn = ("NHWC", "HWIO", "NHWC")
    z = lax.conv_general_dilated(x, p["w1"].reshape(1, 1, cin, g), (1, 1), "VALID",
                                 dimension_numbers=dn)
    z = prelu(bn(z, p["bn1"]), p["alpha1"])
    z = lax.conv_general_dilated(z, p["w2"].reshape(3, 3, 1, g),
                                 (stride, stride), ((1, 1), (1, 1)),
                                 dimension_numbers=dn, feature_group_count=g)
    z = prelu(bn(z, p["bn2"]), p["alpha2"])
    z = lax.conv_general_dilated(z, p["w3"].reshape(1, 1, g, cout), (1, 1), "VALID",
                                 dimension_numbers=dn)
    z = bn(z, p["bn3"])
    if residual:
        z = z + x
    return jnp.transpose(z, (0, 3, 1, 2))


# ----------------------------------------------------------------------------
if __name__ == "__main__":
    key = jax.random.PRNGKey(0)
    kx1, kp1, kx2, kp2 = jax.random.split(key, 4)

    # config 1: module defaults — stride (2,2), pad 1, no residual (downsample block)
    B, IN_C, OUT_C, G, H, W = 2, 4, 8, 8, 16, 16
    x1 = jax.random.normal(kx1, (B, IN_C, H, W), jnp.float32)      # NCHW like PyTorch
    params1 = init_params(kp1, IN_C, OUT_C, G)
    out1 = jax.block_until_ready(depthwise_block(x1, params1, stride=2, residual=False))
    ref1 = jax.block_until_ready(_ref_forward(x1, params1, 2, False))
    assert out1.shape == (B, OUT_C, H // 2, W // 2), out1.shape
    err1 = float(jnp.max(jnp.abs(out1 - ref1)))
    assert err1 < 2e-3, f"stride-2 mismatch vs reference: {err1}"

    # config 2: residual bottleneck usage — stride (1,1), in_c == out_c
    B2, C2, G2, H2, W2 = 2, 8, 16, 8, 8
    x2 = jax.random.normal(kx2, (B2, C2, H2, W2), jnp.float32)
    params2 = init_params(kp2, C2, C2, G2)
    out2 = jax.block_until_ready(depthwise_block(x2, params2, stride=1, residual=True))
    ref2 = jax.block_until_ready(_ref_forward(x2, params2, 1, True))
    assert out2.shape == (B2, C2, H2, W2), out2.shape
    err2 = float(jnp.max(jnp.abs(out2 - ref2)))
    assert err2 < 2e-3, f"residual mismatch vs reference: {err2}"

    print("KERNEL_OK")
</pallas_src>

<mosaic_0001>
module attributes {stable_mosaic.version = 11 : i64} {
  func.func @_depthwise_fused_kernel(%arg0: i32, %arg1: memref<1x256x4xf32, #tpu.memory_space<vmem>>, %arg2: memref<4x8xf32, #tpu.memory_space<vmem>>, %arg3: memref<3x8xf32, #tpu.memory_space<vmem>>, %arg4: memref<9x8xf32, #tpu.memory_space<vmem>>, %arg5: memref<3x8xf32, #tpu.memory_space<vmem>>, %arg6: memref<8x8xf32, #tpu.memory_space<vmem>>, %arg7: memref<2x8xf32, #tpu.memory_space<vmem>>, %arg8: memref<1x8x8x8xf32, #tpu.memory_space<vmem>>, %arg9: memref<2x2x10x10x8xf32, #tpu.memory_space<vmem>>) attributes {dimension_semantics = [#tpu.dimension_semantics<parallel>], iteration_bounds = array<i64: 2>, scalar_prefetch = 0 : i64, scratch_operands = 1 : i64, tpu.core_type = #tpu.core_type<tc>, window_params = [{transform_indices = @transform_0, window_bounds = array<i64: 1, 256, 4>}, {pipeline_mode = #tpu.pipeline_mode<synchronous>, transform_indices = @transform_1, window_bounds = array<i64: 4, 8>}, {pipeline_mode = #tpu.pipeline_mode<synchronous>, transform_indices = @transform_2, window_bounds = array<i64: 3, 8>}, {pipeline_mode = #tpu.pipeline_mode<synchronous>, transform_indices = @transform_3, window_bounds = array<i64: 9, 8>}, {pipeline_mode = #tpu.pipeline_mode<synchronous>, transform_indices = @transform_4, window_bounds = array<i64: 3, 8>}, {pipeline_mode = #tpu.pipeline_mode<synchronous>, transform_indices = @transform_5, window_bounds = array<i64: 8, 8>}, {pipeline_mode = #tpu.pipeline_mode<synchronous>, transform_indices = @transform_6, window_bounds = array<i64: 2, 8>}, {transform_indices = @transform_7, window_bounds = array<i64: 1, 8, 8, 8>}]} {
    %cst = arith.constant 0.000000e+00 : f32
    %0 = vector.broadcast %cst : f32 to vector<2x2x10x10x8xf32>
    %c0 = arith.constant 0 : index
    %c0_0 = arith.constant 0 : index
    %c0_1 = arith.constant 0 : index
    %c0_2 = arith.constant 0 : index
    %c0_3 = arith.constant 0 : index
    %1 = vector.load %arg9[%c0, %c0_0, %c0_1, %c0_2, %c0_3] : memref<2x2x10x10x8xf32, #tpu.memory_space<vmem>>, vector<2x2x10x10x8xf32>
    tpu.vector_store %arg9[%c0, %c0_0, %c0_1, %c0_2, %c0_3], %0 {strides = array<i32>} : memref<2x2x10x10x8xf32, #tpu.memory_space<vmem>>, vector<2x2x10x10x8xf32>,
    %c0_4 = arith.constant 0 : index
    %c0_5 = arith.constant 0 : index
    %c0_6 = arith.constant 0 : index
    %2 = vector.load %arg1[%c0_4, %c0_5, %c0_6] : memref<1x256x4xf32, #tpu.memory_space<vmem>>, vector<1x256x4xf32>
    %3 = vector.shape_cast %2 : vector<1x256x4xf32> to vector<256x4xf32>
    %c0_7 = arith.constant 0 : index
    %c0_8 = arith.constant 0 : index
    %4 = vector.load %arg2[%c0_7, %c0_8] : memref<4x8xf32, #tpu.memory_space<vmem>>, vector<4x8xf32>
    %cst_9 = arith.constant dense<0.000000e+00> : vector<256x8xf32>
    %5 = tpu.matmul %3, %4, %cst_9 {dimension_numbers = #tpu.dot_dimension_numbers<[1], [0], [0], [1], [0, 0, 1, 1], [], []>} : vector<256x4xf32>, vector<4x8xf32>, vector<256x8xf32> -> vector<256x8xf32>
    %c0_10 = arith.constant 0 : index
    %c0_11 = arith.constant 0 : index
    %6 = vector.load %arg3[%c0_10, %c0_11] : memref<3x8xf32, #tpu.memory_space<vmem>>, vector<1x8xf32>
    %7 = vector.broadcast %6 : vector<1x8xf32> to vector<256x8xf32>
    %8 = arith.mulf %5, %7 : vector<256x8xf32>
    %c1 = arith.constant 1 : index
    %c0_12 = arith.constant 0 : index
    %9 = vector.load %arg3[%c1, %c0_12] : memref<3x8xf32, #tpu.memory_space<vmem>>, vector<1x8xf32>
    %10 = vector.broadcast %9 : vector<1x8xf32> to vector<256x8xf32>
    %11 = arith.addf %8, %10 : vector<256x8xf32>
    %cst_13 = arith.constant 0.000000e+00 : f32
    %12 = vector.broadcast %cst_13 : f32 to vector<256x8xf32>
    %13 = arith.maximumf %11, %12 : vector<256x8xf32>
    %c2 = arith.constant 2 : index
    %c0_14 = arith.constant 0 : index
    %14 = vector.load %arg3[%c2, %c0_14] : memref<3x8xf32, #tpu.memory_space<vmem>>, vector<1x8xf32>
    %cst_15 = arith.constant 0.000000e+00 : f32
    %15 = vector.broadcast %cst_15 : f32 to vector<256x8xf32>
    %16 = arith.minimumf %11, %15 : vector<256x8xf32>
    %17 = vector.broadcast %14 : vector<1x8xf32> to vector<256x8xf32>
    %18 = arith.mulf %17, %16 : vector<256x8xf32>
    %19 = arith.addf %13, %18 : vector<256x8xf32>
    %20 = vector.shape_cast %19 : vector<256x8xf32> to vector<2x2x8x8x8xf32>
    %21 = vector.extract_strided_slice %20 {offsets = [0, 0, 0, 0, 0], sizes = [1, 1, 8, 8, 8], strides = [1, 1, 1, 1, 1]} : vector<2x2x8x8x8xf32> to vector<1x1x8x8x8xf32>
    %22 = vector.shape_cast %21 : vector<1x1x8x8x8xf32> to vector<8x8x8xf32>
    %c0_16 = arith.constant 0 : index
    %c0_17 = arith.constant 0 : index
    %c1_18 = arith.constant 1 : index
    %c1_19 = arith.constant 1 : index
    %c0_20 = arith.constant 0 : index
    %23 = vector.load %arg9[%c0_16, %c0_17, %c1_18, %c1_19, %c0_20] : memref<2x2x10x10x8xf32, #tpu.memory_space<vmem>>, vector<1x1x8x8x8xf32>
    %24 = vector.shape_cast %23 : vector<1x1x8x8x8xf32> to vector<8x8x8xf32>
    %25 = vector.shape_cast %22 : vector<8x8x8xf32> to vector<1x1x8x8x8xf32>
    tpu.vector_store %arg9[%c0_16, %c0_17, %c1_18, %c1_19, %c0_20], %25 {strides = array<i32>} : memref<2x2x10x10x8xf32, #tpu.memory_space<vmem>>, vector<1x1x8x8x8xf32>,
    %26 = vector.extract_strided_slice %20 {offsets = [0, 1, 0, 0, 0], sizes = [1, 1, 8, 8, 8], strides = [1, 1, 1, 1, 1]} : vector<2x2x8x8x8xf32> to vector<1x1x8x8x8xf32>
    %27 = vector.shape_cast %26 : vector<1x1x8x8x8xf32> to vector<8x8x8xf32>
    %c0_21 = arith.constant 0 : index
    %c1_22 = arith.constant 1 : index
    %c1_23 = arith.constant 1 : index
    %c1_24 = arith.constant 1 : index
    %c0_25 = arith.constant 0 : index
    %28 = vector.load %arg9[%c0_21, %c1_22, %c1_23, %c1_24, %c0_25] : memref<2x2x10x10x8xf32, #tpu.memory_space<vmem>>, vector<1x1x8x8x8xf32>
    %29 = vector.shape_cast %28 : vector<1x1x8x8x8xf32> to vector<8x8x8xf32>
    %30 = vector.shape_cast %27 : vector<8x8x8xf32> to vector<1x1x8x8x8xf32>
    tpu.vector_store %arg9[%c0_21, %c1_22, %c1_23, %c1_24, %c0_25], %30 {strides = array<i32>} : memref<2x2x10x10x8xf32, #tpu.memory_space<vmem>>, vector<1x1x8x8x8xf32>,
    %31 = vector.extract_strided_slice %20 {offsets = [1, 0, 0, 0, 0], sizes = [1, 1, 8, 8, 8], strides = [1, 1, 1, 1, 1]} : vector<2x2x8x8x8xf32> to vector<1x1x8x8x8xf32>
    %32 = vector.shape_cast %31 : vector<1x1x8x8x8xf32> to vector<8x8x8xf32>
    %c1_26 = arith.constant 1 : index
    %c0_27 = arith.constant 0 : index
    %c1_28 = arith.constant 1 : index
    %c1_29 = arith.constant 1 : index
    %c0_30 = arith.constant 0 : index
    %33 = vector.load %arg9[%c1_26, %c0_27, %c1_28, %c1_29, %c0_30] : memref<2x2x10x10x8xf32, #tpu.memory_space<vmem>>, vector<1x1x8x8x8xf32>
    %34 = vector.shape_cast %33 : vector<1x1x8x8x8xf32> to vector<8x8x8xf32>
    %35 = vector.shape_cast %32 : vector<8x8x8xf32> to vector<1x1x8x8x8xf32>
    tpu.vector_store %arg9[%c1_26, %c0_27, %c1_28, %c1_29, %c0_30], %35 {strides = array<i32>} : memref<2x2x10x10x8xf32, #tpu.memory_space<vmem>>, vector<1x1x8x8x8xf32>,
    %36 = vector.extract_strided_slice %20 {offsets = [1, 1, 0, 0, 0], sizes = [1, 1, 8, 8, 8], strides = [1, 1, 1, 1, 1]} : vector<2x2x8x8x8xf32> to vector<1x1x8x8x8xf32>
    %37 = vector.shape_cast %36 : vector<1x1x8x8x8xf32> to vector<8x8x8xf32>
    %c1_31 = arith.constant 1 : index
    %c1_32 = arith.constant 1 : index
    %c1_33 = arith.constant 1 : index
    %c1_34 = arith.constant 1 : index
    %c0_35 = arith.constant 0 : index
    %38 = vector.load %arg9[%c1_31, %c1_32, %c1_33, %c1_34, %c0_35] : memref<2x2x10x10x8xf32, #tpu.memory_space<vmem>>, vector<1x1x8x8x8xf32>
    %39 = vector.shape_cast %38 : vector<1x1x8x8x8xf32> to vector<8x8x8xf32>
    %40 = vector.shape_cast %37 : vector<8x8x8xf32> to vector<1x1x8x8x8xf32>
    tpu.vector_store %arg9[%c1_31, %c1_32, %c1_33, %c1_34, %c0_35], %40 {strides = array<i32>} : memref<2x2x10x10x8xf32, #tpu.memory_space<vmem>>, vector<1x1x8x8x8xf32>,
    %c0_36 = arith.constant 0 : index
    %c0_37 = arith.constant 0 : index
    %41 = vector.load %arg4[%c0_36, %c0_37] : memref<9x8xf32, #tpu.memory_space<vmem>>, vector<9x8xf32>
    %cst_38 = arith.constant 0.000000e+00 : f32
    %42 = vector.broadcast %cst_38 : f32 to vector<8x8x8xf32>
    %c1_39 = arith.constant 1 : index
    %c1_40 = arith.constant 1 : index
    %c0_41 = arith.constant 0 : index
    %c0_42 = arith.constant 0 : index
    %c0_43 = arith.constant 0 : index
    %43 = vector.load %arg9[%c1_39, %c1_40, %c0_41, %c0_42, %c0_43] : memref<2x2x10x10x8xf32, #tpu.memory_space<vmem>>, vector<1x1x8x8x8xf32>
    %44 = vector.shape_cast %43 : vector<1x1x8x8x8xf32> to vector<8x8x8xf32>
    %45 = vector.extract_strided_slice %41 {offsets = [0, 0], sizes = [1, 8], strides = [1, 1]} : vector<9x8xf32> to vector<1x8xf32>
    %46 = vector.shape_cast %45 : vector<1x8xf32> to vector<1x1x8xf32>
    %47 = vector.broadcast %46 : vector<1x1x8xf32> to vector<8x8x8xf32>
    %48 = arith.mulf %44, %47 : vector<8x8x8xf32>
    %49 = arith.addf %42, %48 : vector<8x8x8xf32>
    %c1_44 = arith.constant 1 : index
    %c0_45 = arith.constant 0 : index
    %c0_46 = arith.constant 0 : index
    %c1_47 = arith.constant 1 : index
    %c0_48 = arith.constant 0 : index
    %50 = vector.load %arg9[%c1_44, %c0_45, %c0_46, %c1_47, %c0_48] : memref<2x2x10x10x8xf32, #tpu.memory_space<vmem>>, vector<1x1x8x8x8xf32>
    %51 = vector.shape_cast %50 : vector<1x1x8x8x8xf32> to vector<8x8x8xf32>
    %52 = vector.extract_strided_slice %41 {offsets = [1, 0], sizes = [1, 8], strides = [1, 1]} : vector<9x8xf32> to vector<1x8xf32>
    %53 = vector.shape_cast %52 : vector<1x8xf32> to vector<1x1x8xf32>
    %54 = vector.broadcast %53 : vector<1x1x8xf32> to vector<8x8x8xf32>
    %55 = arith.mulf %51, %54 : vector<8x8x8xf32>
    %56 = arith.addf %49, %55 : vector<8x8x8xf32>
    %c1_49 = arith.constant 1 : index
    %c1_50 = arith.constant 1 : index
    %c0_51 = arith.constant 0 : index
    %c1_52 = arith.constant 1 : index
    %c0_53 = arith.constant 0 : index
    %57 = vector.load %arg9[%c1_49, %c1_50, %c0_51, %c1_52, %c0_53] : memref<2x2x10x10x8xf32, #tpu.memory_space<vmem>>, vector<1x1x8x8x8xf32>
    %58 = vector.shape_cast %57 : vector<1x1x8x8x8xf32> to vector<8x8x8xf32>
    %59 = vector.extract_strided_slice %41 {offsets = [2, 0], sizes = [1, 8], strides = [1, 1]} : vector<9x8xf32> to vector<1x8xf32>
    %60 = vector.shape_cast %59 : vector<1x8xf32> to vector<1x1x8xf32>
    %61 = vector.broadcast %60 : vector<1x1x8xf32> to vector<8x8x8xf32>
    %62 = arith.mulf %58, %61 : vector<8x8x8xf32>
    %63 = arith.addf %56, %62 : vector<8x8x8xf32>
    %c0_54 = arith.constant 0 : index
    %c1_55 = arith.constant 1 : index
    %c1_56 = arith.constant 1 : index
    %c0_57 = arith.constant 0 : index
    %c0_58 = arith.constant 0 : index
    %64 = vector.load %arg9[%c0_54, %c1_55, %c1_56, %c0_57, %c0_58] : memref<2x2x10x10x8xf32, #tpu.memory_space<vmem>>, vector<1x1x8x8x8xf32>
    %65 = vector.shape_cast %64 : vector<1x1x8x8x8xf32> to vector<8x8x8xf32>
    %66 = vector.extract_strided_slice %41 {offsets = [3, 0], sizes = [1, 8], strides = [1, 1]} : vector<9x8xf32> to vector<1x8xf32>
    %67 = vector.shape_cast %66 : vector<1x8xf32> to vector<1x1x8xf32>
    %68 = vector.broadcast %67 : vector<1x1x8xf32> to vector<8x8x8xf32>
    %69 = arith.mulf %65, %68 : vector<8x8x8xf32>
    %70 = arith.addf %63, %69 : vector<8x8x8xf32>
    %c0_59 = arith.constant 0 : index
    %c0_60 = arith.constant 0 : index
    %c1_61 = arith.constant 1 : index
    %c1_62 = arith.constant 1 : index
    %c0_63 = arith.constant 0 : index
    %71 = vector.load %arg9[%c0_59, %c0_60, %c1_61, %c1_62, %c0_63] : memref<2x2x10x10x8xf32, #tpu.memory_space<vmem>>, vector<1x1x8x8x8xf32>
    %72 = vector.shape_cast %71 : vector<1x1x8x8x8xf32> to vector<8x8x8xf32>
    %73 = vector.extract_strided_slice %41 {offsets = [4, 0], sizes = [1, 8], strides = [1, 1]} : vector<9x8xf32> to vector<1x8xf32>
    %74 = vector.shape_cast %73 : vector<1x8xf32> to vector<1x1x8xf32>
    %75 = vector.broadcast %74 : vector<1x1x8xf32> to vector<8x8x8xf32>
    %76 = arith.mulf %72, %75 : vector<8x8x8xf32>
    %77 = arith.addf %70, %76 : vector<8x8x8xf32>
    %c0_64 = arith.constant 0 : index
    %c1_65 = arith.constant 1 : index
    %c1_66 = arith.constant 1 : index
    %c1_67 = arith.constant 1 : index
    %c0_68 = arith.constant 0 : index
    %78 = vector.load %arg9[%c0_64, %c1_65, %c1_66, %c1_67, %c0_68] : memref<2x2x10x10x8xf32, #tpu.memory_space<vmem>>, vector<1x1x8x8x8xf32>
    %79 = vector.shape_cast %78 : vector<1x1x8x8x8xf32> to vector<8x8x8xf32>
    %80 = vector.extract_strided_slice %41 {offsets = [5, 0], sizes = [1, 8], strides = [1, 1]} : vector<9x8xf32> to vector<1x8xf32>
    %81 = vector.shape_cast %80 : vector<1x8xf32> to vector<1x1x8xf32>
    %82 = vector.broadcast %81 : vector<1x1x8xf32> to vector<8x8x8xf32>
    %83 = arith.mulf %79, %82 : vector<8x8x8xf32>
    %84 = arith.addf %77, %83 : vector<8x8x8xf32>
    %c1_69 = arith.constant 1 : index
    %c1_70 = arith.constant 1 : index
    %c1_71 = arith.constant 1 : index
    %c0_72 = arith.constant 0 : index
    %c0_73 = arith.constant 0 : index
    %85 = vector.load %arg9[%c1_69, %c1_70, %c1_71, %c0_72, %c0_73] : memref<2x2x10x10x8xf32, #tpu.memory_space<vmem>>, vector<1x1x8x8x8xf32>
    %86 = vector.shape_cast %85 : vector<1x1x8x8x8xf32> to vector<8x8x8xf32>
    %87 = vector.extract_strided_slice %41 {offsets = [6, 0], sizes = [1, 8], strides = [1, 1]} : vector<9x8xf32> to vector<1x8xf32>
    %88 = vector.shape_cast %87 : vector<1x8xf32> to vector<1x1x8xf32>
    %89 = vector.broadcast %88 : vector<1x1x8xf32> to vector<8x8x8xf32>
    %90 = arith.mulf %86, %89 : vector<8x8x8xf32>
    %91 = arith.addf %84, %90 : vector<8x8x8xf32>
    %c1_74 = arith.constant 1 : index
    %c0_75 = arith.constant 0 : index
    %c1_76 = arith.constant 1 : index
    %c1_77 = arith.constant 1 : index
    %c0_78 = arith.constant 0 : index
    %92 = vector.load %arg9[%c1_74, %c0_75, %c1_76, %c1_77, %c0_78] : memref<2x2x10x10x8xf32, #tpu.memory_space<vmem>>, vector<1x1x8x8x8xf32>
    %93 = vector.shape_cast %92 : vector<1x1x8x8x8xf32> to vector<8x8x8xf32>
    %94 = vector.extract_strided_slice %41 {offsets = [7, 0], sizes = [1, 8], strides = [1, 1]} : vector<9x8xf32> to vector<1x8xf32>
    %95 = vector.shape_cast %94 : vector<1x8xf32> to vector<1x1x8xf32>
    %96 = vector.broadcast %95 : vector<1x1x8xf32> to vector<8x8x8xf32>
    %97 = arith.mulf %93, %96 : vector<8x8x8xf32>
    %98 = arith.addf %91, %97 : vector<8x8x8xf32>
    %c1_79 = arith.constant 1 : index
    %c1_80 = arith.constant 1 : index
    %c1_81 = arith.constant 1 : index
    %c1_82 = arith.constant 1 : index
    %c0_83 = arith.constant 0 : index
    %99 = vector.load %arg9[%c1_79, %c1_80, %c1_81, %c1_82, %c0_83] : memref<2x2x10x10x8xf32, #tpu.memory_space<vmem>>, vector<1x1x8x8x8xf32>
    %100 = vector.shape_cast %99 : vector<1x1x8x8x8xf32> to vector<8x8x8xf32>
    %101 = vector.extract_strided_slice %41 {offsets = [8, 0], sizes = [1, 8], strides = [1, 1]} : vector<9x8xf32> to vector<1x8xf32>
    %102 = vector.shape_cast %101 : vector<1x8xf32> to vector<1x1x8xf32>
    %103 = vector.broadcast %102 : vector<1x1x8xf32> to vector<8x8x8xf32>
    %104 = arith.mulf %100, %103 : vector<8x8x8xf32>
    %105 = arith.addf %98, %104 : vector<8x8x8xf32>
    %c0_84 = arith.constant 0 : index
    %c0_85 = arith.constant 0 : index
    %106 = vector.load %arg5[%c0_84, %c0_85] : memref<3x8xf32, #tpu.memory_space<vmem>>, vector<1x8xf32>
    %107 = vector.shape_cast %106 : vector<1x8xf32> to vector<1x1x8xf32>
    %108 = vector.broadcast %107 : vector<1x1x8xf32> to vector<8x8x8xf32>
    %109 = arith.mulf %105, %108 : vector<8x8x8xf32>
    %c1_86 = arith.constant 1 : index
    %c0_87 = arith.constant 0 : index
    %110 = vector.load %arg5[%c1_86, %c0_87] : memref<3x8xf32, #tpu.memory_space<vmem>>, vector<1x8xf32>
    %111 = vector.shape_cast %110 : vector<1x8xf32> to vector<1x1x8xf32>
    %112 = vector.broadcast %111 : vector<1x1x8xf32> to vector<8x8x8xf32>
    %113 = arith.addf %109, %112 : vector<8x8x8xf32>
    %cst_88 = arith.constant 0.000000e+00 : f32
    %114 = vector.broadcast %cst_88 : f32 to vector<8x8x8xf32>
    %115 = arith.maximumf %113, %114 : vector<8x8x8xf32>
    %c2_89 = arith.constant 2 : index
    %c0_90 = arith.constant 0 : index
    %116 = vector.load %arg5[%c2_89, %c0_90] : memref<3x8xf32, #tpu.memory_space<vmem>>, vector<1x8xf32>
    %cst_91 = arith.constant 0.000000e+00 : f32
    %117 = vector.broadcast %cst_91 : f32 to vector<8x8x8xf32>
    %118 = arith.minimumf %113, %117 : vector<8x8x8xf32>
    %119 = vector.shape_cast %116 : vector<1x8xf32> to vector<1x1x8xf32>
    %120 = vector.broadcast %119 : vector<1x1x8xf32> to vector<8x8x8xf32>
    %121 = arith.mulf %120, %118 : vector<8x8x8xf32>
    %122 = arith.addf %115, %121 : vector<8x8x8xf32>
    %123 = vector.shape_cast %122 : vector<8x8x8xf32> to vector<64x8xf32>
    %c0_92 = arith.constant 0 : index
    %c0_93 = arith.constant 0 : index
    %124 = vector.load %arg6[%c0_92, %c0_93] : memref<8x8xf32, #tpu.memory_space<vmem>>, vector<8x8xf32>
    %cst_94 = arith.constant dense<0.000000e+00> : vector<64x8xf32>
    %125 = tpu.matmul %123, %124, %cst_94 {dimension_numbers = #tpu.dot_dimension_numbers<[1], [0], [0], [1], [0, 0, 1, 1], [], []>} : vector<64x8xf32>, vector<8x8xf32>, vector<64x8xf32> -> vector<64x8xf32>
    %c0_95 = arith.constant 0 : index
    %c0_96 = arith.constant 0 : index
    %126 = vector.load %arg7[%c0_95, %c0_96] : memref<2x8xf32, #tpu.memory_space<vmem>>, vector<1x8xf32>
    %127 = vector.broadcast %126 : vector<1x8xf32> to vector<64x8xf32>
    %128 = arith.mulf %125, %127 : vector<64x8xf32>
    %c1_97 = arith.constant 1 : index
    %c0_98 = arith.constant 0 : index
    %129 = vector.load %arg7[%c1_97, %c0_98] : memref<2x8xf32, #tpu.memory_space<vmem>>, vector<1x8xf32>
    %130 = vector.broadcast %129 : vector<1x8xf32> to vector<64x8xf32>
    %131 = arith.addf %128, %130 : vector<64x8xf32>
    %132 = vector.shape_cast %131 : vector<64x8xf32> to vector<8x8x8xf32>
    %c0_99 = arith.constant 0 : index
    %c0_100 = arith.constant 0 : index
    %c0_101 = arith.constant 0 : index
    %c0_102 = arith.constant 0 : index
    %133 = vector.load %arg8[%c0_99, %c0_100, %c0_101, %c0_102] : memref<1x8x8x8xf32, #tpu.memory_space<vmem>>, vector<1x8x8x8xf32>
    %134 = vector.shape_cast %133 : vector<1x8x8x8xf32> to vector<8x8x8xf32>
    %135 = vector.shape_cast %132 : vector<8x8x8xf32> to vector<1x8x8x8xf32>
    tpu.vector_store %arg8[%c0_99, %c0_100, %c0_101, %c0_102], %135 {strides = array<i32>} : memref<1x8x8x8xf32, #tpu.memory_space<vmem>>, vector<1x8x8x8xf32>,
    return
  }
  func.func @transform_0(%arg0: i32) -> (i32, i32, i32) {
    %c0_i32 = arith.constant 0 : i32
    %c0_i32_0 = arith.constant 0 : i32
    %c0_i32_1 = arith.constant 0 : i32
    return %arg0, %c0_i32, %c0_i32_0 : i32, i32, i32
  }
  func.func @transform_1(%arg0: i32) -> (i32, i32) {
    %c0_i32 = arith.constant 0 : i32
    %c0_i32_0 = arith.constant 0 : i32
    %c0_i32_1 = arith.constant 0 : i32
    return %c0_i32, %c0_i32_0 : i32, i32
  }
  func.func @transform_2(%arg0: i32) -> (i32, i32) {
    %c0_i32 = arith.constant 0 : i32
    %c0_i32_0 = arith.constant 0 : i32
    %c0_i32_1 = arith.constant 0 : i32
    return %c0_i32, %c0_i32_0 : i32, i32
  }
  func.func @transform_3(%arg0: i32) -> (i32, i32) {
    %c0_i32 = arith.constant 0 : i32
    %c0_i32_0 = arith.constant 0 : i32
    %c0_i32_1 = arith.constant 0 : i32
    return %c0_i32, %c0_i32_0 : i32, i32
  }
  func.func @transform_4(%arg0: i32) -> (i32, i32) {
    %c0_i32 = arith.constant 0 : i32
    %c0_i32_0 = arith.constant 0 : i32
    %c0_i32_1 = arith.constant 0 : i32
    return %c0_i32, %c0_i32_0 : i32, i32
  }
  func.func @transform_5(%arg0: i32) -> (i32, i32) {
    %c0_i32 = arith.constant 0 : i32
    %c0_i32_0 = arith.constant 0 : i32
    %c0_i32_1 = arith.constant 0 : i32
    return %c0_i32, %c0_i32_0 : i32, i32
  }
  func.func @transform_6(%arg0: i32) -> (i32, i32) {
    %c0_i32 = arith.constant 0 : i32
    %c0_i32_0 = arith.constant 0 : i32
    %c0_i32_1 = arith.constant 0 : i32
    return %c0_i32, %c0_i32_0 : i32, i32
  }
  func.func @transform_7(%arg0: i32) -> (i32, i32, i32, i32) {
    %c0_i32 = arith.constant 0 : i32
    %c0_i32_0 = arith.constant 0 : i32
    %c0_i32_1 = arith.constant 0 : i32
    %c0_i32_2 = arith.constant 0 : i32
    return %arg0, %c0_i32, %c0_i32_0, %c0_i32_1 : i32, i32, i32, i32
  }
}

</mosaic_0001>

<bundles_post_ra>
// kernel: tpu_custom_call.1
= control target key start
LH: loop header
LB: loop body
LE: loop exit
PB: predicated region body
PF: predicated region fallthrough
CT: control target
= control target key end

     0   :  { %12 = vsyncpa [#allocation4], 0  ;;  %s2558_s0 = inlined_call_operand.vmem [shape: f32[2,256,4], index: 0, kind: input, shape index: {}]   ;;  %s2559_s1 = inlined_call_operand.vmem [shape: f32[4,8], index: 1, kind: input, shape index: {}]   ;;  %s2560_s2 = inlined_call_operand.vmem [shape: f32[3,8], index: 2, kind: input, shape index: {}]   ;;  %s2561_s3 = inlined_call_operand.vmem [shape: f32[9,8], index: 3, kind: input, shape index: {}]   ;;  %s2562_s4 = inlined_call_operand.vmem [shape: f32[3,8], index: 4, kind: input, shape index: {}]   ;;  %s2563_s5 = inlined_call_operand.vmem [shape: f32[8,8], index: 5, kind: input, shape index: {}]   ;;  %s2564_s6 = inlined_call_operand.vmem [shape: f32[2,8], index: 6, kind: input, shape index: {}]   ;;  %s2565_s7 = inlined_call_operand.hbm [shape: f32[2,8,8,8], index: 7, kind: output, shape index: {}]  }
   0x1   :  { %14 = vsyncpa [#allocation4 + $0x1], 0  ;;  %s1842_s24 = smov 0   ;;  %s1844_s25 = smov 0  }
   0x2   :  { %s1846_s26 = smov 0   ;;  %s1848_s27 = smov 0  }
   0x3 LB: > { %s1863_s28 = sadd.s32 4294967295, %s1796_s27   ;;  %s1520_s29 = sadd.s32 4294967294, %s1796_s27   ;;  %s1796_s27 = sphi %s1848_s27, %s2571_s27   ;;  %s1792_s26 = sphi %s1846_s26, %s2570_s26   ;;  %s1788_s25 = sphi %s1844_s25, %s2569_s25   ;;  %s1784_s24 = sphi %s1842_s24, %s2568_s24  }
   0x4   : > { %s1867_s30 = sadd.s32 1, %s1796_s27   ;;  %s179_s8 = sadd.s32 1, %s1792_s26 }
   0x5   : > { %s176_s9 = ssub.s32 %s1796_s27, %s1867_s30  ;;  %p189_p0 = scmp.ne.s32.totalorder %s1792_s26, %s1788_s25 }
   0x6   : > { %p177_p1 = scmp.eq.s32.totalorder %s176_s9, 0  ;;  %p190_p2 = scmp.eq.s32.totalorder %s1863_s28, 1 }
   0x7   : > { %p195_p3 = scmp.ne.s32.totalorder %s1788_s25, %s1784_s24  ;;  %p196_p4 = scmp.eq.s32.totalorder %s1520_s29, 1 }
   0x8   : > { %s1878_s10 = scalar_select %p177_p1, %s1792_s26, %s179_s8  }
   0x9   : > { %p1880_p5 = por %p190_p2, %p189_p0  ;;  %p1884_p6 = por %p196_p4, %p195_p3 }
   0xa   : > { %p1523_p7 = scmp.ge.s32.totalorder %s1796_s27, 1  ;;  %p240_p8 = scmp.lt.s32.totalorder %s1796_s27, 3 }
   0xc   : > { %p241_p9 = pnand %p1523_p7, %p240_p8 }
   0xd   : > { %v391_v0 = vld [vmem:[%s2559_s1] sm:$0xf] (!%p241_p9)  ;;  %vm489_vm0 = vcmask (!%p241_p9), 1043456   ;;  %p272_p10 = scmp.lt.s32.totalorder (!%p241_p9), %s1863_s28, 1  ;;  %vm277_vm1 = vcmask (!%p241_p9), 64512   ;;  %vm279_vm2 = vcmask (!%p241_p9), 58368   ;;  %v972_v35 = vlaneseq (!%p241_p9) }
   0xe   : > { %244 = sbr.rel (%p241_p9) target bundleno = 584 (0x248), region = 48  ;;  %1626 = vmatprep.subr.msk.mxu0 (!%p241_p9), %vm489_vm0, %v391_v0  ;;  %1690 = vmatprep.subr.msk.mxu1 (!%p241_p9), %vm489_vm0, %v391_v0  ;;  %v1798_v1 = vmov (!%p241_p9), 0.0   ;;  %vm392_vm3 = vcmask (!%p241_p9), 31744   ;;  %v1280_v34 = vld [vmem:[%s2563_s5] sm:$0xff] (!%p241_p9)  ;;  %s269_s29 = sand.u32 (!%p241_p9), 1, %s1788_s25  }
   0xf   : > { %1627 = vmatpush3.msk.msra.mxu0 (!%p241_p9), %vm489_vm0, %v391_v0  ;;  %1691 = vmatpush3.msk.msra.mxu1 (!%p241_p9), %vm489_vm0, %v391_v0  ;;  %283 = vst.msk [vmem:[#allocation2 + $0x20] sm:$0xff] (!%p241_p9), %vm277_vm1, %v1798_v1  ;;  %281 = vst.msk [vmem:[#allocation2 + $0x10] sm:$0xff] (!%p241_p9), %vm277_vm1, %v1798_v1  ;;  %v2106_v36 = vshrl.u32 (!%p241_p9), %v972_v35, 7  ;;  %v2113_v39 = vld [vmem:[%s2561_s3] sm:$0xff] (!%p241_p9)  ;;  %s1524_s13 = sshll.u32 (!%p241_p9), %s269_s29, 6  ;;  %s1583_s17 = sshll.u32 (!%p241_p9), %s1863_s28, 10 }
  0x10   : > { %284 = vst.msk [vmem:[#allocation2 + $0x28] sm:$0x3] (!%p241_p9), %vm279_vm2, %v1798_v1  ;;  %282 = vst.msk [vmem:[#allocation2 + $0x18] sm:$0x3] (!%p241_p9), %vm279_vm2, %v1798_v1  ;;  %1676 = vmatprep.subr.mxu1 (!%p241_p9), %v1280_v34  ;;  %v2130_v49 = vld [vmem:[%s2560_s2] ss:$0 sm:$0xff] (!%p241_p9)  ;;  %s2509_s21 = scalar_lea.hbm (!%p241_p9), %s2565_s7, %s1583_s17 }
  0x11   : > { %285 = vst.msk [vmem:[#allocation2 + $0x30] sm:$0xff] (!%p241_p9), %vm277_vm1, %v1798_v1  ;;  %287 = vst.msk [vmem:[#allocation2 + $0x40] sm:$0xff] (!%p241_p9), %vm277_vm1, %v1798_v1  ;;  %v974_v37 = vsub.s32 (!%p241_p9), 0, %v2106_v36  ;;  %v1003_v38 = vsub.s32 (!%p241_p9), 1, %v2106_v36  ;;  %v1031_v42 = vsub.s32 (!%p241_p9), 2, %v2106_v36  ;;  %v1059_v50 = vsub.s32 (!%p241_p9), 3, %v2106_v36 }
  0x12   : > { %286 = vst.msk [vmem:[#allocation2 + $0x38] sm:$0x3] (!%p241_p9), %vm279_vm2, %v1798_v1  ;;  %288 = vst.msk [vmem:[#allocation2 + $0x48] sm:$0x3] (!%p241_p9), %vm279_vm2, %v1798_v1  ;;  %v1087_v51 = vsub.s32 (!%p241_p9), 4, %v2106_v36  ;;  %v1115_v54 = vsub.s32 (!%p241_p9), 5, %v2106_v36 }
  0x13   : > { %289 = vst.msk [vmem:[#allocation2 + $0x50] sm:$0xff] (!%p241_p9), %vm277_vm1, %v1798_v1  ;;  %291 = vst.msk [vmem:[#allocation2 + $0x60] sm:$0xff] (!%p241_p9), %vm277_vm1, %v1798_v1  ;;  %v2116_v40 = vrot.slane (!%p241_p9), %v2113_v39, %v974_v37  ;;  %v2119_v41 = vrot.slane (!%p241_p9), %v2113_v39, %v1003_v38  ;;  %v2125_v47 = vrot.slane (!%p241_p9), %v2113_v39, %v1031_v42  ;;  %v2139_v56 = vld [vmem:[%s2560_s2 + $0x1] ss:$0 sm:$0xff] (!%p241_p9)  ;;  %v1143_v58 = vsub.s32 (!%p241_p9), 6, %v2106_v36  ;;  %s1799_s23 = smov (!%p241_p9), [#allocation3]  }
  0x14   : > { %290 = vst.msk [vmem:[#allocation2 + $0x58] sm:$0x3] (!%p241_p9), %vm279_vm2, %v1798_v1  ;;  %292 = vst.msk [vmem:[#allocation2 + $0x68] sm:$0x3] (!%p241_p9), %vm279_vm2, %v1798_v1  ;;  %s1738_s8 = sshll.u32 (!%p241_p9), %s1799_s23, 4  ;;  %s1739_s8 = int_to_ptr.vmem [resolvable:$false] %s1738_s8 }
  0x15   : > { %s1895_s15 = scalar_select %p272_p10, %s1863_s28, 1  ;;  %293 = vst.msk [vmem:[#allocation2 + $0x70] sm:$0xff] %vm277_vm1, %v1798_v1  ;;  %295 = vst.msk [vmem:[#allocation2 + $0x80] sm:$0xff] %vm277_vm1, %v1798_v1 }
  0x16   : > { %294 = vst.msk [vmem:[#allocation2 + $0x78] sm:$0x3] %vm279_vm2, %v1798_v1  ;;  %296 = vst.msk [vmem:[#allocation2 + $0x88] sm:$0x3] %vm279_vm2, %v1798_v1  ;;  %s2517_s28 = scalar_lea.sflag [#allocation4], %s269_s29  ;;  %s1740_s9 = scalar_lea.vmem %s1739_s8, 2048 }
  0x17   : > { %301 = vst.msk [vmem:[#allocation2 + $0xb0] sm:$0xff] %vm277_vm1, %v1798_v1  ;;  %303 = vst.msk [vmem:[#allocation2 + $0xc0] sm:$0xff] %vm277_vm1, %v1798_v1  ;;  %s1582_s16 = sshll.u32 %s1895_s15, 8 }
  0x18   : > { %302 = vst.msk [vmem:[#allocation2 + $0xb8] sm:$0x3] %vm279_vm2, %v1798_v1  ;;  %304 = vst.msk [vmem:[#allocation2 + $0xc8] sm:$0x3] %vm279_vm2, %v1798_v1  ;;  %s2037_s19 = scalar_lea.vmem %s2558_s0, %s1582_s16  ;;  %s271_s16 = scalar_lea.vmem [#allocation3], %s1524_s13 }
  0x19   : > { %305 = vst.msk [vmem:[#allocation2 + $0xd0] sm:$0xff] %vm277_vm1, %v1798_v1  ;;  %307 = vst.msk [vmem:[#allocation2 + $0xe0] sm:$0xff] %vm277_vm1, %v1798_v1  ;;  %v359_v2 = vld [vmem:[%s2037_s19] sm:$0xff]  ;;  %v360_v3 = vld [vmem:[%s2037_s19 + $0x8] sm:$0xff]  ;;  %s1458_s18 = sshll.u32 %s271_s16, 4  ;;  %s2511_s18 = int_to_ptr.vmem [resolvable:$true] %s1458_s18 }
  0x1a   : > { %306 = vst.msk [vmem:[#allocation2 + $0xd8] sm:$0x3] %vm279_vm2, %v1798_v1  ;;  %308 = vst.msk [vmem:[#allocation2 + $0xe8] sm:$0x3] %vm279_vm2, %v1798_v1  ;;  %v379_v4 = vld [vmem:[%s2037_s19 + $0xa0] sm:$0xff]  ;;  %1628 = vmatprep.mubr.msk.f32.mxu0 %vm392_vm3, %v359_v2  ;;  %v361_v5 = vld [vmem:[%s2037_s19 + $0x10] sm:$0xff]  ;;  %v2150_v2 = vrot.slane %v2113_v39, %v1087_v51  ;;  %p1741_p0 = scmp.lt.s32.totalorder %s2511_s18, %s1739_s8 }
  0x1b   : > { %309 = vst.msk [vmem:[#allocation2 + $0xf0] sm:$0xff] %vm277_vm1, %v1798_v1  ;;  %311 = vst.msk [vmem:[#allocation2 + $0x100] sm:$0xff] %vm277_vm1, %v1798_v1  ;;  %1658 = vmatprep.mubr.msk.f32.mxu1 %vm392_vm3, %v379_v4  ;;  %v380_v6 = vld [vmem:[%s2037_s19 + $0xa8] sm:$0xff]  ;;  %1629 = vmatmul.mubr.msk.f32.vlgmr.msra.gmra.mrb[0].mxu0 %vm392_vm3, %v360_v3  ;;  %v381_v7 = vld [vmem:[%s2037_s19 + $0xb0] sm:$0xff]  ;;  %s1734_s22 = scalar_lea.vmem %s2511_s18, 1024 }
  0x1c   : > { %310 = vst.msk [vmem:[#allocation2 + $0xf8] sm:$0x3] %vm279_vm2, %v1798_v1  ;;  %312 = vst.msk [vmem:[#allocation2 + $0x108] sm:$0x3] %vm279_vm2, %v1798_v1  ;;  %1659 = vmatmul.mubr.msk.f32.vlgmr.msra.gmra.mrb[0].mxu1 %vm392_vm3, %v380_v6  ;;  %1631 = vmatprep.mubr.msk.f32.mxu0 %vm392_vm3, %v361_v5  ;;  %v362_v8 = vld [vmem:[%s2037_s19 + $0x18] sm:$0xff]  ;;  %v363_v10 = vld [vmem:[%s2037_s19 + $0x20] sm:$0xff]  ;;  %v2157_v6 = vrot.slane %v2113_v39, %v1115_v54  ;;  %p1735_p11 = scmp.ne.s32.totalorder %s2511_s18, %s1734_s22  ;;  %p1742_p1 = scmp.lt.s32.totalorder %s1740_s9, %s1734_s22 }
  0x1d   : > { %313 = vst.msk [vmem:[#allocation2 + $0x110] sm:$0xff] %vm277_vm1, %v1798_v1  ;;  %315 = vst.msk [vmem:[#allocation2 + $0x120] sm:$0xff] %vm277_vm1, %v1798_v1  ;;  %1661 = vmatprep.mubr.msk.f32.mxu1 %vm392_vm3, %v381_v7  ;;  %v382_v9 = vld [vmem:[%s2037_s19 + $0xb8] sm:$0xff]  ;;  %v383_v11 = vld [vmem:[%s2037_s19 + $0xc0] sm:$0xff]  ;;  %1677 = vmatpush3.msra.mxu1 %v1280_v34 }
  0x1e   : > { %314 = vst.msk [vmem:[#allocation2 + $0x118] sm:$0x3] %vm279_vm2, %v1798_v1  ;;  %316 = vst.msk [vmem:[#allocation2 + $0x128] sm:$0x3] %vm279_vm2, %v1798_v1  ;;  %v364_v12 = vld [vmem:[%s2037_s19 + $0x28] sm:$0xff]  ;;  %v365_v14 = vld [vmem:[%s2037_s19 + $0x30] sm:$0xff]  ;;  %p1736_p12 = pnand %p1735_p11, %p1880_p5  ;;  %p1743_p2 = por %p1742_p1, %p1741_p0 }
  0x1f   : > { %319 = vst.msk [vmem:[#allocation2 + $0x140] sm:$0xff] %vm277_vm1, %v1798_v1  ;;  %321 = vst.msk [vmem:[#allocation2 + $0x150] sm:$0xff] %vm277_vm1, %v1798_v1  ;;  %1632 = vmatmul.mubr.msk.f32.gmra.mrb[2].mxu0 %vm392_vm3, %v362_v8  ;;  %v384_v13 = vld [vmem:[%s2037_s19 + $0xc8] sm:$0xff]  ;;  %v385_v15 = vld [vmem:[%s2037_s19 + $0xd0] sm:$0xff] }
  0x20   : > { %320 = vst.msk [vmem:[#allocation2 + $0x148] sm:$0x3] %vm279_vm2, %v1798_v1  ;;  %322 = vst.msk [vmem:[#allocation2 + $0x158] sm:$0x3] %vm279_vm2, %v1798_v1  ;;  %1662 = vmatmul.mubr.msk.f32.gmra.mrb[2].mxu1 %vm392_vm3, %v382_v9  ;;  %1634 = vmatprep.mubr.msk.f32.mxu0 %vm392_vm3, %v363_v10  ;;  %v366_v16 = vld [vmem:[%s2037_s19 + $0x38] sm:$0xff]  ;;  %v367_v18 = vld [vmem:[%s2037_s19 + $0x40] sm:$0xff]  ;;  %p1737_p13 = pneg %p1736_p12 }
  0x21   : > { %323 = vst.msk [vmem:[#allocation2 + $0x160] sm:$0xff] %vm277_vm1, %v1798_v1  ;;  %325 = vst.msk [vmem:[#allocation2 + $0x170] sm:$0xff] %vm277_vm1, %v1798_v1  ;;  %1664 = vmatprep.mubr.msk.f32.mxu1 %vm392_vm3, %v383_v11  ;;  %v386_v17 = vld [vmem:[%s2037_s19 + $0xd8] sm:$0xff]  ;;  %v387_v19 = vld [vmem:[%s2037_s19 + $0xe0] sm:$0xff] }
  0x22   : > { %324 = vst.msk [vmem:[#allocation2 + $0x168] sm:$0x3] %vm279_vm2, %v1798_v1  ;;  %326 = vst.msk [vmem:[#allocation2 + $0x178] sm:$0x3] %vm279_vm2, %v1798_v1  ;;  %v368_v20 = vld [vmem:[%s2037_s19 + $0x48] sm:$0xff]  ;;  %v369_v22 = vld [vmem:[%s2037_s19 + $0x50] sm:$0xff]  ;;  %p1744_p3 = pnand %p1743_p2, %p1737_p13 }
  0x23   : > { %327 = vst.msk [vmem:[#allocation2 + $0x180] sm:$0xff] %vm277_vm1, %v1798_v1  ;;  %329 = vst.msk [vmem:[#allocation2 + $0x190] sm:$0xff] %vm277_vm1, %v1798_v1  ;;  %1635 = vmatmul.mubr.msk.f32.gmra.mrb[4].mxu0 %vm392_vm3, %v364_v12  ;;  %v388_v21 = vld [vmem:[%s2037_s19 + $0xe8] sm:$0xff]  ;;  %v389_v23 = vld [vmem:[%s2037_s19 + $0xf0] sm:$0xff]  ;;  %v2167_v12 = vrot.slane %v2113_v39, %v1143_v58 }
  0x24   : > { %328 = vst.msk [vmem:[#allocation2 + $0x188] sm:$0x3] %vm279_vm2, %v1798_v1  ;;  %330 = vst.msk [vmem:[#allocation2 + $0x198] sm:$0x3] %vm279_vm2, %v1798_v1  ;;  %1665 = vmatmul.mubr.msk.f32.gmra.mrb[4].mxu1 %vm392_vm3, %v384_v13  ;;  %1637 = vmatprep.mubr.msk.f32.mxu0 %vm392_vm3, %v365_v14  ;;  %v370_v24 = vld [vmem:[%s2037_s19 + $0x58] sm:$0xff]  ;;  %v371_v26 = vld [vmem:[%s2037_s19 + $0x60] sm:$0xff] }
  0x25   : > { %331 = vst.msk [vmem:[#allocation2 + $0x1a0] sm:$0xff] %vm277_vm1, %v1798_v1  ;;  %333 = vst.msk [vmem:[#allocation2 + $0x1b0] sm:$0xff] %vm277_vm1, %v1798_v1  ;;  %1667 = vmatprep.mubr.msk.f32.mxu1 %vm392_vm3, %v385_v15  ;;  %v390_v25 = vld [vmem:[%s2037_s19 + $0xf8] sm:$0xff]  ;;  %v372_v27 = vld [vmem:[%s2037_s19 + $0x68] sm:$0xff]  ;;  %v1171_v13 = vsub.s32 7, %v2106_v36 }
  0x26   : > { %332 = vst.msk [vmem:[#allocation2 + $0x1a8] sm:$0x3] %vm279_vm2, %v1798_v1  ;;  %334 = vst.msk [vmem:[#allocation2 + $0x1b8] sm:$0x3] %vm279_vm2, %v1798_v1  ;;  %v373_v28 = vld [vmem:[%s2037_s19 + $0x70] sm:$0xff]  ;;  %v374_v29 = vld [vmem:[%s2037_s19 + $0x78] sm:$0xff] }
  0x27   : > { %335 = vst.msk [vmem:[#allocation2 + $0x1c0] sm:$0xff] %vm277_vm1, %v1798_v1  ;;  %339 = vst.msk [vmem:[#allocation2 + $0x1e0] sm:$0xff] %vm277_vm1, %v1798_v1  ;;  %1638 = vmatmul.mubr.msk.f32.gmra.mrb[6].mxu0 %vm392_vm3, %v366_v16  ;;  %v375_v30 = vld [vmem:[%s2037_s19 + $0x80] sm:$0xff]  ;;  %v376_v31 = vld [vmem:[%s2037_s19 + $0x88] sm:$0xff] }
  0x28   : > { %336 = vst.msk [vmem:[#allocation2 + $0x1c8] sm:$0x3] %vm279_vm2, %v1798_v1  ;;  %340 = vst.msk [vmem:[#allocation2 + $0x1e8] sm:$0x3] %vm279_vm2, %v1798_v1  ;;  %1668 = vmatmul.mubr.msk.f32.gmra.mrb[6].mxu1 %vm392_vm3, %v386_v17  ;;  %1640 = vmatprep.mubr.msk.f32.mxu0 %vm392_vm3, %v367_v18  ;;  %v377_v32 = vld [vmem:[%s2037_s19 + $0x90] sm:$0xff]  ;;  %v378_v33 = vld [vmem:[%s2037_s19 + $0x98] sm:$0xff] }
  0x29   : > { %341 = vst.msk [vmem:[#allocation2 + $0x1f0] sm:$0xff] %vm277_vm1, %v1798_v1  ;;  %343 = vst.msk [vmem:[#allocation2 + $0x200] sm:$0xff] %vm277_vm1, %v1798_v1  ;;  %1670 = vmatprep.mubr.msk.f32.mxu1 %vm392_vm3, %v387_v19  ;;  %v993_v44 = vld [vmem:[#allocation2 + $0x141] sm:$0xff] }
  0x2a   : > { %342 = vst.msk [vmem:[#allocation2 + $0x1f8] sm:$0x3] %vm279_vm2, %v1798_v1  ;;  %344 = vst.msk [vmem:[#allocation2 + $0x208] sm:$0x3] %vm279_vm2, %v1798_v1  ;;  %v1005_v46 = vmul.f32 %v2119_v41, %v993_v44  ;;  %v2162_v7 = vld [vmem:[%s2560_s2 + $0x2] ss:$0 sm:$0xff] }
  0x2b   : > { %345 = vst.msk [vmem:[#allocation2 + $0x210] sm:$0xff] %vm277_vm1, %v1798_v1  ;;  %347 = vst.msk [vmem:[#allocation2 + $0x220] sm:$0xff] %vm277_vm1, %v1798_v1  ;;  %1641 = vmatmul.mubr.msk.f32.gmra.mrb[8].mxu0 %vm392_vm3, %v368_v20 }
  0x2c   : > { %346 = vst.msk [vmem:[#allocation2 + $0x218] sm:$0x3] %vm279_vm2, %v1798_v1  ;;  %348 = vst.msk [vmem:[#allocation2 + $0x228] sm:$0x3] %vm279_vm2, %v1798_v1  ;;  %1671 = vmatmul.mubr.msk.f32.gmra.mrb[8].mxu1 %vm392_vm3, %v388_v21  ;;  %1643 = vmatprep.mubr.msk.f32.mxu0 %vm392_vm3, %v369_v22 }
  0x2d   : > { %349 = vst.msk [vmem:[#allocation2 + $0x230] sm:$0xff] %vm277_vm1, %v1798_v1  ;;  %351 = vst.msk [vmem:[#allocation2 + $0x240] sm:$0xff] %vm277_vm1, %v1798_v1  ;;  %1673 = vmatprep.mubr.msk.f32.mxu1 %vm392_vm3, %v389_v23 }
  0x2e   : > { %350 = vst.msk [vmem:[#allocation2 + $0x238] sm:$0x3] %vm279_vm2, %v1798_v1  ;;  %352 = vst.msk [vmem:[#allocation2 + $0x248] sm:$0x3] %vm279_vm2, %v1798_v1  ;;  %v964_v43 = vld [vmem:[#allocation2 + $0x1e0] sm:$0xff] }
  0x2f   : > { %353 = vst.msk [vmem:[#allocation2 + $0x250] sm:$0xff] %vm277_vm1, %v1798_v1  ;;  %355 = vst.msk [vmem:[#allocation2 + $0x260] sm:$0xff] %vm277_vm1, %v1798_v1  ;;  %1644 = vmatmul.mubr.msk.f32.gmra.mrb[10].mxu0 %vm392_vm3, %v370_v24  ;;  %v976_v45 = vmul.f32 %v2116_v40, %v964_v43  ;;  %v1021_v48 = vld [vmem:[#allocation2 + $0x1e1] sm:$0xff] }
  0x30   : > { %354 = vst.msk [vmem:[#allocation2 + $0x258] sm:$0x3] %vm279_vm2, %v1798_v1  ;;  %356 = vst.msk [vmem:[#allocation2 + $0x268] sm:$0x3] %vm279_vm2, %v1798_v1  ;;  %1674 = vmatmul.mubr.msk.f32.gmra.mrb[10].mxu1 %vm392_vm3, %v390_v25  ;;  %1646 = vmatprep.mubr.msk.f32.mxu0 %vm392_vm3, %v371_v26  ;;  %v1033_v53 = vmul.f32 %v2125_v47, %v1021_v48  ;;  %v2147_v1 = vrot.slane %v2113_v39, %v1059_v50 }
  0x31   : > { %v1013_v52 = vadd.f32 %v1005_v46, %v976_v45 }
  0x33   : > { %1647 = vmatmul.mubr.msk.f32.gmra.mrb[12].mxu0 %vm392_vm3, %v372_v27  ;;  %v2154_v5 = vadd.f32 %v1033_v53, %v1013_v52 }
  0x34   : > { %1649 = vmatprep.mubr.msk.f32.mxu0 %vm392_vm3, %v373_v28 }
  0x37   : > { %1650 = vmatmul.mubr.msk.f32.gmra.mrb[14].mxu0 %vm392_vm3, %v374_v29 }
  0x38   : > { %1652 = vmatprep.mubr.msk.f32.mxu0 %vm392_vm3, %v375_v30 }
  0x3b   : > { %1653 = vmatmul.mubr.msk.f32.gmra.mrb[16].mxu0 %vm392_vm3, %v376_v31 }
  0x3c   : > { %1655 = vmatprep.mubr.msk.f32.mxu0 %vm392_vm3, %v377_v32 }
  0x3f   : > { %1656 = vmatmul.mubr.msk.f32.gmra.mrb[18].mxu0 %vm392_vm3, %v378_v33 }
  0xee   : > { %v1630_v55 = vpop.f32.mrb[0].mxu0 }
  0xef   : > { %v1660_v57 = vpop.f32.mrb[0].mxu1  ;;  %v724_v59 = vmul.f32 %v1630_v55, %v2130_v49  ;;  %v559_v60 = vpop.f32.mrb[1].mxu0 }
  0xf0   : > { %v744_v61 = vmul.f32 %v1660_v57, %v2130_v49  ;;  %v659_v62 = vpop.f32.mrb[1].mxu1  ;;  %v723_v63 = vmul.f32 %v2130_v49, %v559_v60 }
  0xf1   : > { %v743_v0 = vmul.f32 %v2130_v49, %v659_v62  ;;  %v761_v3 = vadd.f32 %v2139_v56, %v724_v59 }
  0xf2   : > { %v781_v4 = vadd.f32 %v2139_v56, %v744_v61  ;;  %v760_v8 = vadd.f32 %v2139_v56, %v723_v63  ;;  %v1633_v9 = vpop.f32.mrb[2].mxu0 }
  0xf3   : > { %v780_v10 = vadd.f32 %v2139_v56, %v743_v0  ;;  %v1663_v11 = vpop.f32.mrb[2].mxu1  ;;  %v793_v14 = vmax.f32 %v761_v3, 0.0  ;;  %v826_v15 = vmin.f32 %v761_v3, 0.0  ;;  %v726_v16 = vmul.f32 %v1633_v9, %v2130_v49  ;;  %v569_v17 = vpop.f32.mrb[3].mxu0 }
  0xf4   : > { %v813_v18 = vmax.f32 %v781_v4, 0.0  ;;  %v669_v19 = vpop.f32.mrb[3].mxu1  ;;  %v792_v20 = vmax.f32 %v760_v8, 0.0  ;;  %v825_v21 = vmin.f32 %v760_v8, 0.0  ;;  %v725_v22 = vmul.f32 %v2130_v49, %v569_v17 }
  0xf5   : > { %v846_v23 = vmin.f32 %v781_v4, 0.0  ;;  %v862_v24 = vmul.f32 %v2162_v7, %v826_v15  ;;  %v763_v25 = vadd.f32 %v2139_v56, %v726_v16  ;;  %v812_v26 = vmax.f32 %v780_v10, 0.0 }
  0xf6   : > { %v845_v27 = vmin.f32 %v780_v10, 0.0  ;;  %v861_v28 = vmul.f32 %v2162_v7, %v825_v21  ;;  %v762_v29 = vadd.f32 %v2139_v56, %v725_v22  ;;  %v1636_v30 = vpop.f32.mrb[4].mxu0  ;;  %v746_v32 = vmul.f32 %v1663_v11, %v2130_v49 }
  0xf7   : > { %v882_v31 = vmul.f32 %v2162_v7, %v846_v23  ;;  %v1666_v33 = vpop.f32.mrb[4].mxu1  ;;  %v894_v34 = vadd.f32 %v862_v24, %v793_v14  ;;  %v795_v35 = vmax.f32 %v763_v25, 0.0  ;;  %v828_v37 = vmin.f32 %v763_v25, 0.0  ;;  %v579_v42 = vpop.f32.mrb[5].mxu0 }
  0xf8   : > { %v728_v38 = vmul.f32 %v1636_v30, %v2130_v49  ;;  %v679_v43 = vpop.f32.mrb[5].mxu1  ;;  %v893_v44 = vadd.f32 %v861_v28, %v792_v20  ;;  %v794_v45 = vmax.f32 %v762_v29, 0.0  ;;  %v827_v46 = vmin.f32 %v762_v29, 0.0 }
  0xf9   : > { %v727_v48 = vmul.f32 %v2130_v49, %v579_v42  ;;  %927 = vst.msk [vmem:[#allocation2 + $0x21] sm:$0xff] %vm277_vm1, %v894_v34  ;;  %v864_v50 = vmul.f32 %v2162_v7, %v828_v37  ;;  %v914_v52 = vadd.f32 %v882_v31, %v813_v18  ;;  %v881_v53 = vmul.f32 %v2162_v7, %v845_v27 }
  0xfa   : > { %v765_v51 = vadd.f32 %v2139_v56, %v728_v38  ;;  %926 = vst.msk [vmem:[#allocation2 + $0x11] sm:$0xff] %vm277_vm1, %v893_v44  ;;  %v863_v54 = vmul.f32 %v2162_v7, %v827_v46  ;;  %v1639_v57 = vpop.f32.mrb[6].mxu0  ;;  %v783_v58 = vadd.f32 %v2139_v56, %v746_v32  ;;  %v745_v59 = vmul.f32 %v2130_v49, %v669_v19 }
  0xfb   : > { %v764_v55 = vadd.f32 %v2139_v56, %v727_v48  ;;  %v1669_v60 = vpop.f32.mrb[6].mxu1  ;;  %v896_v61 = vadd.f32 %v864_v50, %v795_v35  ;;  %949 = vst.msk [vmem:[#allocation2 + $0x1a1] sm:$0xff] %vm277_vm1, %v914_v52  ;;  %v730_v0 = vmul.f32 %v1639_v57, %v2130_v49  ;;  %v589_v3 = vpop.f32.mrb[7].mxu0  ;;  %v913_v11 = vadd.f32 %v881_v53, %v812_v26 }
  0xfc   : > { %v797_v62 = vmax.f32 %v765_v51, 0.0  ;;  %v830_v63 = vmin.f32 %v765_v51, 0.0  ;;  %v689_v4 = vpop.f32.mrb[7].mxu1  ;;  %v895_v8 = vadd.f32 %v863_v54, %v794_v45  ;;  %v729_v16 = vmul.f32 %v2130_v49, %v589_v3 }
  0xfd   : > { %v796_v9 = vmax.f32 %v764_v55, 0.0  ;;  %v829_v10 = vmin.f32 %v764_v55, 0.0  ;;  %929 = vst.msk [vmem:[#allocation2 + $0x41] sm:$0xff] %vm277_vm1, %v896_v61  ;;  %v767_v15 = vadd.f32 %v2139_v56, %v730_v0  ;;  %v815_v17 = vmax.f32 %v783_v58, 0.0  ;;  %948 = vst.msk [vmem:[#allocation2 + $0x191] sm:$0xff] %vm277_vm1, %v913_v11 }
  0xfe   : > { %v866_v14 = vmul.f32 %v2162_v7, %v830_v63  ;;  %928 = vst.msk [vmem:[#allocation2 + $0x31] sm:$0xff] %vm277_vm1, %v895_v8  ;;  %v848_v19 = vmin.f32 %v783_v58, 0.0  ;;  %v782_v20 = vadd.f32 %v2139_v56, %v745_v59  ;;  %v748_v21 = vmul.f32 %v1666_v33, %v2130_v49  ;;  %v1642_v22 = vpop.f32.mrb[8].mxu0 }
  0xff   : > { %v865_v18 = vmul.f32 %v2162_v7, %v829_v10  ;;  %v1672_v23 = vpop.f32.mrb[8].mxu1  ;;  %v799_v25 = vmax.f32 %v767_v15, 0.0  ;;  %v832_v26 = vmin.f32 %v767_v15, 0.0  ;;  %v766_v27 = vadd.f32 %v2139_v56, %v729_v16  ;;  %v599_v28 = vpop.f32.mrb[9].mxu0 }
 0x100   : > { %v898_v24 = vadd.f32 %v866_v14, %v797_v62  ;;  %v2201_v29 = vpop.f32.mrb[9].mxu1  ;;  %v884_v31 = vmul.f32 %v2162_v7, %v848_v19  ;;  %v814_v32 = vmax.f32 %v782_v20, 0.0  ;;  %v847_v34 = vmin.f32 %v782_v20, 0.0 }
 0x101   : > { %v897_v30 = vadd.f32 %v865_v18, %v796_v9  ;;  %v868_v35 = vmul.f32 %v2162_v7, %v832_v26  ;;  %v798_v33 = vmax.f32 %v766_v27, 0.0  ;;  %v831_v37 = vmin.f32 %v766_v27, 0.0 }
 0x102   : > { %931 = vst.msk [vmem:[#allocation2 + $0x61] sm:$0xff] %vm277_vm1, %v898_v24  ;;  %v785_v38 = vadd.f32 %v2139_v56, %v748_v21  ;;  %v916_v42 = vadd.f32 %v884_v31, %v815_v17  ;;  %v883_v44 = vmul.f32 %v2162_v7, %v847_v34  ;;  %v732_v45 = vmul.f32 %v1642_v22, %v2130_v49  ;;  %v1645_v48 = vpop.f32.mrb[10].mxu0 }
 0x103   : > { %930 = vst.msk [vmem:[#allocation2 + $0x51] sm:$0xff] %vm277_vm1, %v897_v30  ;;  %v747_v46 = vmul.f32 %v2130_v49, %v679_v43  ;;  %v1675_v50 = vpop.f32.mrb[10].mxu1  ;;  %v900_v51 = vadd.f32 %v868_v35, %v799_v25  ;;  %v867_v52 = vmul.f32 %v2162_v7, %v831_v37  ;;  %v609_v55 = vpop.f32.mrb[11].mxu0  ;;  %v731_v62 = vmul.f32 %v2130_v49, %v599_v28 }
 0x104   : > { %v817_v53 = vmax.f32 %v785_v38, 0.0  ;;  %v850_v54 = vmin.f32 %v785_v38, 0.0  ;;  %v2212_v57 = vpop.f32.mrb[11].mxu1  ;;  %951 = vst.msk [vmem:[#allocation2 + $0x1c1] sm:$0xff] %vm277_vm1, %v916_v42  ;;  %v915_v58 = vadd.f32 %v883_v44, %v814_v32  ;;  %v769_v59 = vadd.f32 %v2139_v56, %v732_v45 }
 0x105   : > { %v784_v61 = vadd.f32 %v2139_v56, %v747_v46  ;;  %933 = vst.msk [vmem:[#allocation2 + $0x81] sm:$0xff] %vm277_vm1, %v900_v51  ;;  %v899_v43 = vadd.f32 %v867_v52, %v798_v33  ;;  %v750_v0 = vmul.f32 %v1669_v60, %v2130_v49  ;;  %v749_v3 = vmul.f32 %v2130_v49, %v689_v4 }
 0x106   : > { %v886_v63 = vmul.f32 %v2162_v7, %v850_v54  ;;  %950 = vst.msk [vmem:[#allocation2 + $0x1b1] sm:$0xff] %vm277_vm1, %v915_v58  ;;  %v801_v8 = vmax.f32 %v769_v59, 0.0  ;;  %v834_v9 = vmin.f32 %v769_v59, 0.0  ;;  %v1648_v14 = vpop.f32.mrb[12].mxu0  ;;  %v768_v16 = vadd.f32 %v2139_v56, %v731_v62 }
 0x107   : > { %v816_v10 = vmax.f32 %v784_v61, 0.0  ;;  %v849_v11 = vmin.f32 %v784_v61, 0.0  ;;  %932 = vst.msk [vmem:[#allocation2 + $0x71] sm:$0xff] %vm277_vm1, %v899_v43  ;;  %v787_v17 = vadd.f32 %v2139_v56, %v750_v0  ;;  %v786_v18 = vadd.f32 %v2139_v56, %v749_v3  ;;  %v619_v19 = vpop.f32.mrb[13].mxu0 }
 0x108   : > { %v918_v15 = vadd.f32 %v886_v63, %v817_v53  ;;  %v870_v60 = vmul.f32 %v2162_v7, %v834_v9  ;;  %v752_v20 = vmul.f32 %v1672_v23, %v2130_v49  ;;  %v734_v21 = vmul.f32 %v1645_v48, %v2130_v49 }
 0x109   : > { %v885_v4 = vmul.f32 %v2162_v7, %v849_v11  ;;  %v800_v22 = vmax.f32 %v768_v16, 0.0  ;;  %v833_v24 = vmin.f32 %v768_v16, 0.0  ;;  %v819_v25 = vmax.f32 %v787_v17, 0.0 }
 0x10a   : > { %954 = vst.msk [vmem:[#allocation2 + $0x201] sm:$0xff] %vm277_vm1, %v918_v15  ;;  %v852_v26 = vmin.f32 %v787_v17, 0.0  ;;  %v902_v27 = vadd.f32 %v870_v60, %v801_v8  ;;  %v818_v30 = vmax.f32 %v786_v18, 0.0  ;;  %v851_v31 = vmin.f32 %v786_v18, 0.0  ;;  %v1651_v32 = vpop.f32.mrb[14].mxu0 }
 0x10b   : > { %v917_v28 = vadd.f32 %v885_v4, %v816_v10  ;;  %v869_v34 = vmul.f32 %v2162_v7, %v833_v24  ;;  %v789_v33 = vadd.f32 %v2139_v56, %v752_v20  ;;  %v771_v23 = vadd.f32 %v2139_v56, %v734_v21  ;;  %v629_v37 = vpop.f32.mrb[15].mxu0 }
 0x10c   : > { %v888_v35 = vmul.f32 %v2162_v7, %v852_v26  ;;  %936 = vst.msk [vmem:[#allocation2 + $0xc1] sm:$0xff] %vm277_vm1, %v902_v27  ;;  %v887_v38 = vmul.f32 %v2162_v7, %v851_v31  ;;  %v751_v42 = vmul.f32 %v2130_v49, %v2201_v29  ;;  %v733_v44 = vmul.f32 %v2130_v49, %v609_v55 }
 0x10d   : > { %953 = vst.msk [vmem:[#allocation2 + $0x1f1] sm:$0xff] %vm277_vm1, %v917_v28  ;;  %v754_v45 = vmul.f32 %v1675_v50, %v2130_v49  ;;  %v901_v46 = vadd.f32 %v869_v34, %v800_v22  ;;  %v821_v51 = vmax.f32 %v789_v33, 0.0  ;;  %v854_v52 = vmin.f32 %v789_v33, 0.0 }
 0x10e   : > { %v920_v48 = vadd.f32 %v888_v35, %v819_v25  ;;  %v919_v53 = vadd.f32 %v887_v38, %v818_v30  ;;  %v803_v54 = vmax.f32 %v771_v23, 0.0  ;;  %v836_v58 = vmin.f32 %v771_v23, 0.0  ;;  %v1654_v61 = vpop.f32.mrb[16].mxu0 }
 0x10f   : > { %v788_v59 = vadd.f32 %v2139_v56, %v751_v42  ;;  %935 = vst.msk [vmem:[#allocation2 + $0xb1] sm:$0xff] %vm277_vm1, %v901_v46  ;;  %v890_v29 = vmul.f32 %v2162_v7, %v854_v52  ;;  %v770_v55 = vadd.f32 %v2139_v56, %v733_v44  ;;  %v791_v50 = vadd.f32 %v2139_v56, %v754_v45  ;;  %v639_v43 = vpop.f32.mrb[17].mxu0 }
 0x110   : > { %956 = vst.msk [vmem:[#allocation2 + $0x221] sm:$0xff] %vm277_vm1, %v920_v48  ;;  %v736_v62 = vmul.f32 %v1648_v14, %v2130_v49  ;;  %955 = vst.msk [vmem:[#allocation2 + $0x211] sm:$0xff] %vm277_vm1, %v919_v53  ;;  %v872_v63 = vmul.f32 %v2162_v7, %v836_v58  ;;  %v753_v8 = vmul.f32 %v2130_v49, %v2212_v57 }
 0x111   : > { %v820_v0 = vmax.f32 %v788_v59, 0.0  ;;  %v853_v3 = vmin.f32 %v788_v59, 0.0  ;;  %v922_v9 = vadd.f32 %v890_v29, %v821_v51  ;;  %v802_v10 = vmax.f32 %v770_v55, 0.0 }
 0x112   : > { %v835_v11 = vmin.f32 %v770_v55, 0.0  ;;  %v823_v15 = vmax.f32 %v791_v50, 0.0  ;;  %v904_v16 = vadd.f32 %v872_v63, %v803_v54  ;;  %v856_v18 = vmin.f32 %v791_v50, 0.0  ;;  %v1657_v60 = vpop.f32.mrb[18].mxu0 }
 0x113   : > { %v889_v17 = vmul.f32 %v2162_v7, %v853_v3  ;;  %v773_v14 = vadd.f32 %v2139_v56, %v736_v62  ;;  %958 = vst.msk [vmem:[#allocation2 + $0x241] sm:$0xff] %vm277_vm1, %v922_v9  ;;  %v790_v20 = vadd.f32 %v2139_v56, %v753_v8  ;;  %v735_v21 = vmul.f32 %v2130_v49, %v619_v19  ;;  %v649_v22 = vpop.f32.mrb[19].mxu0  ;;  %v1077_v3 = vld [vmem:[#allocation2 + $0x11] sm:$0xff] }
 0x114   : > { %v871_v4 = vmul.f32 %v2162_v7, %v835_v11  ;;  %v738_v57 = vmul.f32 %v1651_v32, %v2130_v49  ;;  %938 = vst.msk [vmem:[#allocation2 + $0xe1] sm:$0xff] %vm277_vm1, %v904_v16  ;;  %v892_v25 = vmul.f32 %v2162_v7, %v856_v18  ;;  %v737_v33 = vmul.f32 %v2130_v49, %v629_v37 }
 0x115   : > { %v921_v24 = vadd.f32 %v889_v17, %v820_v0  ;;  %v805_v26 = vmax.f32 %v773_v14, 0.0  ;;  %v838_v27 = vmin.f32 %v773_v14, 0.0  ;;  %v822_v30 = vmax.f32 %v790_v20, 0.0 }
 0x116   : > { %v903_v28 = vadd.f32 %v871_v4, %v802_v10  ;;  %v855_v31 = vmin.f32 %v790_v20, 0.0  ;;  %v772_v34 = vadd.f32 %v2139_v56, %v735_v21  ;;  %v924_v35 = vadd.f32 %v892_v25, %v823_v15  ;;  %v1049_v59 = vld [vmem:[#allocation2 + $0xb0] sm:$0xff]  ;;  %v2298_v20 = vld [vmem:[%s2561_s3 + $0x8] ss:$0 sm:$0xff] }
 0x117   : > { %957 = vst.msk [vmem:[#allocation2 + $0x231] sm:$0xff] %vm277_vm1, %v921_v24  ;;  %v874_v19 = vmul.f32 %v2162_v7, %v838_v27  ;;  %v775_v32 = vadd.f32 %v2139_v56, %v738_v57  ;;  %v740_v42 = vmul.f32 %v1654_v61, %v2130_v49  ;;  %v2274_v44 = vrot.slane %v2113_v39, %v1171_v13  ;;  %v1105_v14 = vld [vmem:[#allocation2 + $0xb1] sm:$0xff]  ;;  %v1050_v27 = vld [vmem:[#allocation2 + $0xc0] sm:$0xff] }
 0x118   : > { %937 = vst.msk [vmem:[#allocation2 + $0xd1] sm:$0xff] %vm277_vm1, %v903_v28  ;;  %v891_v23 = vmul.f32 %v2162_v7, %v855_v31  ;;  %v837_v38 = vmin.f32 %v772_v34, 0.0  ;;  %960 = vst.msk [vmem:[#allocation2 + $0x261] sm:$0xff] %vm277_vm1, %v924_v35  ;;  %v804_v46 = vmax.f32 %v772_v34, 0.0  ;;  %v774_v51 = vadd.f32 %v2139_v56, %v737_v33  ;;  %v1078_v28 = vld [vmem:[#allocation2 + $0x21] sm:$0xff] }
 0x119   : > { %v906_v45 = vadd.f32 %v874_v19, %v805_v26  ;;  %v840_v48 = vmin.f32 %v775_v32, 0.0  ;;  %v777_v53 = vadd.f32 %v2139_v56, %v740_v42  ;;  %v739_v54 = vmul.f32 %v2130_v49, %v639_v43  ;;  %v1106_v35 = vld [vmem:[#allocation2 + $0xc1] sm:$0xff] }
 0x11a   : > { %v923_v37 = vadd.f32 %v891_v23, %v822_v30  ;;  %v873_v52 = vmul.f32 %v2162_v7, %v837_v38  ;;  %v807_v36 = vmax.f32 %v775_v32, 0.0  ;;  %v839_v13 = vmin.f32 %v774_v51, 0.0  ;;  %v1134_v19 = vld [vmem:[#allocation2 + $0x200] sm:$0xff] }
 0x11b   : > { %940 = vst.msk [vmem:[#allocation2 + $0x101] sm:$0xff] %vm277_vm1, %v906_v45  ;;  %v876_v39 = vmul.f32 %v2162_v7, %v840_v48  ;;  %v742_v58 = vmul.f32 %v1657_v60, %v2130_v49  ;;  %v806_v29 = vmax.f32 %v774_v51, 0.0  ;;  %v842_v55 = vmin.f32 %v777_v53, 0.0  ;;  %v1133_v60 = vld [vmem:[#allocation2 + $0x1f0] sm:$0xff]  ;;  %v1190_v32 = vld [vmem:[#allocation2 + $0x201] sm:$0xff] }
 0x11c   : > { %959 = vst.msk [vmem:[#allocation2 + $0x251] sm:$0xff] %vm277_vm1, %v923_v37  ;;  %v905_v61 = vadd.f32 %v873_v52, %v804_v46  ;;  %v776_v50 = vadd.f32 %v2139_v56, %v739_v54  ;;  %v875_v63 = vmul.f32 %v2162_v7, %v839_v13  ;;  %v741_v0 = vmul.f32 %v2130_v49, %v649_v22  ;;  %v1189_v22 = vld [vmem:[#allocation2 + $0x1f1] sm:$0xff] }
 0x11d   : > { %v908_v62 = vadd.f32 %v876_v39, %v807_v36  ;;  %v779_v43 = vadd.f32 %v2139_v56, %v742_v58  ;;  %v809_v8 = vmax.f32 %v777_v53, 0.0  ;;  %v878_v9 = vmul.f32 %v2162_v7, %v842_v55  ;;  %v1079_v46 = vld [vmem:[#allocation2 + $0x31] sm:$0xff] }
 0x11e   : > { %939 = vst.msk [vmem:[#allocation2 + $0xf1] sm:$0xff] %vm277_vm1, %v905_v61  ;;  %v841_v10 = vmin.f32 %v776_v50, 0.0  ;;  %v1061_v11 = vmul.f32 %v2147_v1, %v1049_v59  ;;  %v907_v15 = vadd.f32 %v875_v63, %v806_v29  ;;  %v808_v16 = vmax.f32 %v776_v50, 0.0  ;;  %v1135_v53 = vld [vmem:[#allocation2 + $0x210] sm:$0xff]  ;;  %v1052_v59 = vld [vmem:[#allocation2 + $0xe0] sm:$0xff] }
 0x11f   : > { %942 = vst.msk [vmem:[#allocation2 + $0x121] sm:$0xff] %vm277_vm1, %v908_v62  ;;  %v844_v17 = vmin.f32 %v779_v43, 0.0  ;;  %v778_v18 = vadd.f32 %v2139_v56, %v741_v0  ;;  %v910_v4 = vadd.f32 %v878_v9, %v809_v8  ;;  %v1089_v57 = vmul.f32 %v2150_v2, %v1077_v3  ;;  %v1051_v45 = vld [vmem:[#allocation2 + $0xd0] sm:$0xff]  ;;  %v1080_v61 = vld [vmem:[#allocation2 + $0x41] sm:$0xff] }
 0x120   : > { %v877_v49 = vmul.f32 %v2162_v7, %v841_v10  ;;  %v1069_v21 = vadd.f32 %v1061_v11, %v2154_v5  ;;  %941 = vst.msk [vmem:[#allocation2 + $0x111] sm:$0xff] %vm277_vm1, %v907_v15  ;;  %v811_v24 = vmax.f32 %v779_v43, 0.0  ;;  %v1117_v34 = vmul.f32 %v2157_v6, %v1105_v14  ;;  %v1191_v54 = vld [vmem:[#allocation2 + $0x211] sm:$0xff]  ;;  %v1108_v63 = vld [vmem:[#allocation2 + $0xe1] sm:$0xff] }
 0x121   : > { %v880_v56 = vmul.f32 %v2162_v7, %v844_v17  ;;  %v810_v25 = vmax.f32 %v778_v18, 0.0  ;;  %v843_v26 = vmin.f32 %v778_v18, 0.0  ;;  %945 = vst.msk [vmem:[#allocation2 + $0x161] sm:$0xff] %vm277_vm1, %v910_v4  ;;  %v1145_v5 = vmul.f32 %v2167_v12, %v1133_v60  ;;  %v1136_v43 = vld [vmem:[#allocation2 + $0x220] sm:$0xff]  ;;  %v1081_v15 = vld [vmem:[#allocation2 + $0x51] sm:$0xff] }
 0x122   : > { %v909_v30 = vadd.f32 %v877_v49, %v808_v16  ;;  %v1097_v31 = vadd.f32 %v1089_v57, %v1069_v21  ;;  %v2309_v38 = vmul.f32 %v2298_v20, %v1189_v22  ;;  %v2312_v42 = vmul.f32 %v1133_v60, %v2116_v40  ;;  %v2337_v0 = vld [vmem:[#allocation2 + $0x221] sm:$0xff] }
 0x123   : > { %v912_v33 = vadd.f32 %v880_v56, %v811_v24  ;;  %v879_v23 = vmul.f32 %v2162_v7, %v843_v26  ;;  %v2316_v51 = vmul.f32 %v1189_v22, %v2125_v47  ;;  %v2319_v37 = vmul.f32 %v2147_v1, %v1050_v27  ;;  %v1107_v7 = vld [vmem:[#allocation2 + $0xd1] sm:$0xff] }
 0x124   : > { %944 = vst.msk [vmem:[#allocation2 + $0x151] sm:$0xff] %vm277_vm1, %v909_v30  ;;  %v1125_v48 = vadd.f32 %v1117_v34, %v1097_v31  ;;  %v2322_v52 = vmul.f32 %v2150_v2, %v1078_v28  ;;  %v2326_v39 = vmul.f32 %v2157_v6, %v1106_v35  ;;  %v2329_v13 = vmul.f32 %v2167_v12, %v1134_v19  ;;  %v1137_v24 = vld [vmem:[#allocation2 + $0x230] sm:$0xff] }
 0x125   : > { %947 = vst.msk [vmem:[#allocation2 + $0x181] sm:$0xff] %vm277_vm1, %v912_v33  ;;  %v911_v36 = vadd.f32 %v879_v23, %v810_v25  ;;  %v2332_v58 = vmul.f32 %v2298_v20, %v1190_v32  ;;  %v978_v55 = vmul.f32 %v1134_v19, %v2116_v40  ;;  %v1035_v50 = vmul.f32 %v1190_v32, %v2125_v47  ;;  %v1053_v11 = vld [vmem:[#allocation2 + $0xf0] sm:$0xff]  ;;  %v1054_v32 = vld [vmem:[#allocation2 + $0x100] sm:$0xff] }
 0x126   : > { %v1153_v29 = vadd.f32 %v1145_v5, %v1125_v48  ;;  %v1063_v62 = vmul.f32 %v2147_v1, %v1051_v45  ;;  %v2341_v3 = vmul.f32 %v2150_v2, %v1079_v46  ;;  %v2344_v8 = vmul.f32 %v2157_v6, %v1107_v7  ;;  %v1109_v60 = vld [vmem:[#allocation2 + $0xf1] sm:$0xff] }
 0x127   : > { %946 = vst.msk [vmem:[#allocation2 + $0x171] sm:$0xff] %vm277_vm1, %v911_v36  ;;  %v2347_v9 = vmul.f32 %v2167_v12, %v1135_v53  ;;  %v2350_v10 = vmul.f32 %v2298_v20, %v1191_v54  ;;  %v979_v16 = vmul.f32 %v1135_v53, %v2116_v40  ;;  %v1036_v17 = vmul.f32 %v1191_v54, %v2125_v47  ;;  %v1165_v28 = vld [vmem:[#allocation2 + $0x191] sm:$0xff] }
 0x128   : > { %v2355_v18 = vmul.f32 %v2147_v1, %v1052_v59  ;;  %v2358_v14 = vmul.f32 %v2150_v2, %v1080_v61  ;;  %v1162_v4 = vld [vmem:[#allocation2 + $0x161] sm:$0xff]  ;;  %v2361_v49 = vmul.f32 %v2157_v6, %v1108_v63  ;;  %v2364_v21 = vmul.f32 %v2167_v12, %v1136_v43  ;;  %v1193_v30 = vld [vmem:[#allocation2 + $0x231] sm:$0xff] }
 0x129   : > { %v980_v57 = vmul.f32 %v1136_v43, %v2116_v40  ;;  %v1037_v22 = vmul.f32 %v2337_v0, %v2125_v47  ;;  %v2370_v56 = vmul.f32 %v2274_v44, %v1162_v4  ;;  %v1007_v25 = vmul.f32 %v1162_v4, %v2119_v41  ;;  %v1082_v59 = vld [vmem:[#allocation2 + $0x61] sm:$0xff] }
 0x12a   : > { %v1065_v26 = vmul.f32 %v2147_v1, %v1053_v11  ;;  %v1093_v27 = vmul.f32 %v2150_v2, %v1081_v15  ;;  %v1121_v34 = vmul.f32 %v2157_v6, %v1109_v60  ;;  %v2377_v5 = vmul.f32 %v2167_v12, %v1137_v24  ;;  %v1110_v15 = vld [vmem:[#allocation2 + $0x101] sm:$0xff]  ;;  %v2399_v60 = vld [vmem:[%s2562_s4] ss:$0 sm:$0xff] }
 0x12b   : > { %v1161_v31 = vld [vmem:[#allocation2 + $0x151] sm:$0xff]  ;;  %v2380_v35 = vmul.f32 %v2274_v44, %v1165_v28  ;;  %v2383_v19 = vmul.f32 %v2298_v20, %v1193_v30  ;;  %v1015_v45 = vadd.f32 %v1007_v25, %v978_v55  ;;  %v981_v48 = vmul.f32 %v1137_v24, %v2116_v40 }
 0x12c   : > { %v1173_v33 = vmul.f32 %v2274_v44, %v1161_v31  ;;  %v1006_v23 = vmul.f32 %v1161_v31, %v2119_v41  ;;  %v1164_v46 = vld [vmem:[#allocation2 + $0x181] sm:$0xff]  ;;  %v1010_v54 = vmul.f32 %v1165_v28, %v2119_v41  ;;  %v1038_v36 = vmul.f32 %v1193_v30, %v2125_v47 }
 0x12d   : > { %v2389_v7 = vmul.f32 %v2274_v44, %v1164_v46  ;;  %v1009_v53 = vmul.f32 %v1164_v46, %v2119_v41  ;;  %v1043_v43 = vadd.f32 %v1035_v50, %v1015_v45  ;;  %v1066_v55 = vmul.f32 %v2147_v1, %v1054_v32  ;;  %v1166_v31 = vld [vmem:[#allocation2 + $0x1a1] sm:$0xff] }
 0x12e   : > { %v1181_v61 = vadd.f32 %v1173_v33, %v1153_v29  ;;  %v1014_v63 = vadd.f32 %v1006_v23, %v2312_v42  ;;  %v1163_v11 = vld [vmem:[#allocation2 + $0x171] sm:$0xff]  ;;  %v1018_v28 = vadd.f32 %v1010_v54, %v981_v48  ;;  %v1094_v30 = vmul.f32 %v2150_v2, %v1082_v59  ;;  %v2409_v32 = vld [vmem:[%s2562_s4 + $0x1] ss:$0 sm:$0xff] }
 0x12f   : > { %v1175_v4 = vmul.f32 %v2274_v44, %v1163_v11  ;;  %v1008_v24 = vmul.f32 %v1163_v11, %v2119_v41  ;;  %v1017_v25 = vadd.f32 %v1009_v53, %v980_v57  ;;  %v1071_v50 = vadd.f32 %v1063_v62, %v1043_v43  ;;  %v1138_v57 = vld [vmem:[#allocation2 + $0x240] sm:$0xff] }
 0x130   : > { %v1209_v29 = vadd.f32 %v2309_v38, %v1181_v61  ;;  %v1042_v42 = vadd.f32 %v2316_v51, %v1014_v63  ;;  %v1046_v45 = vadd.f32 %v1038_v36, %v1018_v28  ;;  %v1122_v46 = vmul.f32 %v2157_v6, %v1110_v15  ;;  %v1194_v63 = vld [vmem:[#allocation2 + $0x241] sm:$0xff] }
 0x131   : > { %v1016_v33 = vadd.f32 %v1008_v24, %v979_v16  ;;  %v1045_v23 = vadd.f32 %v1037_v22, %v1017_v25  ;;  %v1099_v51 = vadd.f32 %v2341_v3, %v1071_v50  ;;  %v1150_v62 = vmul.f32 %v2167_v12, %v1138_v57 }
 0x132   : > { %v1222_v48 = vmul.f32 %v2399_v60, %v1209_v29  ;;  %v1070_v38 = vadd.f32 %v2319_v37, %v1042_v42  ;;  %v1074_v59 = vadd.f32 %v1066_v55, %v1046_v45  ;;  %v1178_v61 = vmul.f32 %v2274_v44, %v1166_v31  ;;  %v2424_v37 = vld [vmem:[%s2562_s4 + $0x2] ss:$0 sm:$0xff]  ;;  %v1055_v42 = vld [vmem:[#allocation2 + $0x110] sm:$0xff] }
 0x133   : > { %v1044_v53 = vadd.f32 %v1036_v17, %v1016_v33  ;;  %v1073_v54 = vadd.f32 %v1065_v26, %v1045_v23  ;;  %v1127_v36 = vadd.f32 %v2344_v8, %v1099_v51  ;;  %v1206_v43 = vmul.f32 %v2298_v20, %v1194_v63  ;;  %v1083_v45 = vld [vmem:[#allocation2 + $0x71] sm:$0xff] }
 0x134   : > { %v1235_v16 = vadd.f32 %v2409_v32, %v1222_v48  ;;  %v1098_v22 = vadd.f32 %v2322_v52, %v1070_v38  ;;  %v1102_v26 = vadd.f32 %v1094_v30, %v1074_v59  ;;  %v982_v11 = vmul.f32 %v1138_v57, %v2116_v40  ;;  %v1111_v38 = vld [vmem:[#allocation2 + $0x111] sm:$0xff] }
 0x135   : > { %v1072_v3 = vadd.f32 %v2355_v18, %v1044_v53  ;;  %v1101_v17 = vadd.f32 %v1093_v27, %v1073_v54  ;;  %v1155_v52 = vadd.f32 %v2347_v9, %v1127_v36  ;;  %v1011_v29 = vmul.f32 %v1166_v31, %v2119_v41 }
 0x136   : > { %v1243_v55 = vmax.f32 %v1235_v16, 0.0  ;;  %v1252_v15 = vmin.f32 %v1235_v16, 0.0  ;;  %v1126_v24 = vadd.f32 %v2326_v39, %v1098_v22  ;;  %v1130_v28 = vadd.f32 %v1122_v46, %v1102_v26  ;;  %v1139_v16 = vld [vmem:[#allocation2 + $0x250] sm:$0xff] }
 0x137   : > { %v1100_v8 = vadd.f32 %v2358_v14, %v1072_v3  ;;  %v1129_v25 = vadd.f32 %v1121_v34, %v1101_v17  ;;  %v1183_v27 = vadd.f32 %v1175_v4, %v1155_v52  ;;  %v1039_v30 = vmul.f32 %v1194_v63, %v2125_v47  ;;  %v1167_v26 = vld [vmem:[#allocation2 + $0x1b1] sm:$0xff] }
 0x138   : > { %v1264_v50 = vmul.f32 %v2424_v37, %v1252_v15  ;;  %v1154_v18 = vadd.f32 %v2329_v13, %v1126_v24  ;;  %v1158_v23 = vadd.f32 %v1150_v62, %v1130_v28  ;;  %v1019_v9 = vadd.f32 %v1011_v29, %v982_v11 }
 0x139   : > { %v1128_v33 = vadd.f32 %v2361_v49, %v1100_v8  ;;  %v1157_v39 = vadd.f32 %v2377_v5, %v1129_v25  ;;  %v1211_v31 = vadd.f32 %v2350_v10, %v1183_v27  ;;  %v1067_v46 = vmul.f32 %v2147_v1, %v1055_v42  ;;  %v1195_v25 = vld [vmem:[#allocation2 + $0x251] sm:$0xff]  ;;  %v1056_v27 = vld [vmem:[#allocation2 + $0x120] sm:$0xff] }
 0x13a   : > { %v1272_v14 = vadd.f32 %v1264_v50, %v1243_v55  ;;  %v1182_v34 = vadd.f32 %v2370_v56, %v1154_v18  ;;  %v1186_v4 = vadd.f32 %v1178_v61, %v1158_v23  ;;  %v1047_v48 = vadd.f32 %v1039_v30, %v1019_v9 }
 0x13b   : > { %v1156_v57 = vadd.f32 %v2364_v21, %v1128_v33  ;;  %v1185_v13 = vadd.f32 %v2380_v35, %v1157_v39  ;;  %v1224_v5 = vmul.f32 %v2399_v60, %v1211_v31  ;;  %v1204_v56 = vmul.f32 %v2298_v20, %v2337_v0 }
 0x13c   : > { %1678 = vmatprep.mubr.msk.f32.mxu1 %vm277_vm1, %v1272_v14  ;;  %v1210_v49 = vadd.f32 %v2332_v58, %v1182_v34  ;;  %v1095_v10 = vmul.f32 %v2150_v2, %v1083_v45  ;;  %v1214_v62 = vadd.f32 %v1206_v43, %v1186_v4  ;;  %v1075_v35 = vadd.f32 %v1067_v46, %v1047_v48  ;;  %v1084_v4 = vld [vmem:[#allocation2 + $0x81] sm:$0xff] }
 0x13d   : > { %v1184_v51 = vadd.f32 %v2389_v7, %v1156_v57  ;;  %v1213_v21 = vadd.f32 %v2383_v19, %v1185_v13  ;;  %v1237_v54 = vadd.f32 %v2409_v32, %v1224_v5  ;;  %v1123_v59 = vmul.f32 %v2157_v6, %v1111_v38  ;;  %v1112_v5 = vld [vmem:[#allocation2 + $0x121] sm:$0xff] }
 0x13e   : > { %v1223_v53 = vmul.f32 %v2399_v60, %v1210_v49  ;;  %v1227_v63 = vmul.f32 %v2399_v60, %v1214_v62  ;;  %v1103_v0 = vadd.f32 %v1095_v10, %v1075_v35  ;;  %v1151_v19 = vmul.f32 %v2167_v12, %v1139_v16 }
 0x13f   : > { %v1212_v58 = vadd.f32 %v1204_v56, %v1184_v51  ;;  %v1226_v61 = vmul.f32 %v2399_v60, %v1213_v21  ;;  %v1254_v7 = vmin.f32 %v1237_v54, 0.0  ;;  %v1179_v15 = vmul.f32 %v2274_v44, %v1167_v26  ;;  %v1140_v56 = vld [vmem:[#allocation2 + $0x260] sm:$0xff] }
 0x140   : > { %v1236_v22 = vadd.f32 %v2409_v32, %v1223_v53  ;;  %v1240_v3 = vadd.f32 %v2409_v32, %v1227_v63  ;;  %v1131_v17 = vadd.f32 %v1123_v59, %v1103_v0  ;;  %v1245_v24 = vmax.f32 %v1237_v54, 0.0  ;;  %v1196_v63 = vld [vmem:[#allocation2 + $0x261] sm:$0xff] }
 0x141   : > { %v1225_v36 = vmul.f32 %v2399_v60, %v1212_v58  ;;  %v1239_v43 = vadd.f32 %v2409_v32, %v1226_v61  ;;  %v1266_v55 = vmul.f32 %v2424_v37, %v1254_v7  ;;  %v983_v28 = vmul.f32 %v1139_v16, %v2116_v40  ;;  %v1168_v61 = vld [vmem:[#allocation2 + $0x1c1] sm:$0xff] }
 0x142   : > { %v1253_v11 = vmin.f32 %v1236_v22, 0.0  ;;  %v1244_v29 = vmax.f32 %v1236_v22, 0.0  ;;  %v1159_v50 = vadd.f32 %v1151_v19, %v1131_v17  ;;  %v1207_v18 = vmul.f32 %v2298_v20, %v1195_v25 }
 0x143   : > { %v1238_v52 = vadd.f32 %v2409_v32, %v1225_v36  ;;  %v1256_v8 = vmin.f32 %v1239_v43, 0.0  ;;  %v1274_v30 = vadd.f32 %v1266_v55, %v1245_v24  ;;  %v1257_v39 = vmin.f32 %v1240_v3, 0.0 }
 0x144   : > { %v1265_v42 = vmul.f32 %v2424_v37, %v1253_v11  ;;  %v1012_v23 = vmul.f32 %v1167_v26, %v2119_v41  ;;  %v1187_v14 = vadd.f32 %v1179_v15, %v1159_v50  ;;  %v1040_v34 = vmul.f32 %v1195_v25, %v2125_v47 }
 0x145   : > { %v1255_v33 = vmin.f32 %v1238_v52, 0.0  ;;  %v1246_v45 = vmax.f32 %v1238_v52, 0.0  ;;  %v1268_v40 = vmul.f32 %v2424_v37, %v1256_v8  ;;  %v1068_v57 = vmul.f32 %v2147_v1, %v1056_v27 }
 0x146   : > { %v1273_v9 = vadd.f32 %v1265_v42, %v1244_v29  ;;  %v1020_v46 = vadd.f32 %v1012_v23, %v983_v28  ;;  %v1215_v13 = vadd.f32 %v1207_v18, %v1187_v14  ;;  %v1247_v41 = vmax.f32 %v1239_v43, 0.0 }
 0x147   : > { %v1267_v31 = vmul.f32 %v2424_v37, %v1255_v33  ;;  %v1269_v49 = vmul.f32 %v2424_v37, %v1257_v39  ;;  %v1096_v21 = vmul.f32 %v2150_v2, %v1084_v4  ;;  %v1248_v1 = vmax.f32 %v1240_v3, 0.0 }
 0x148   : > { %1679 = vmatmul.mubr.msk.f32.vlgmr.msra.gmra.mrb[12].mxu1 %vm277_vm1, %v1273_v9  ;;  %v1048_v38 = vadd.f32 %v1040_v34, %v1020_v46  ;;  %v1228_v47 = vmul.f32 %v2399_v60, %v1215_v13  ;;  %v1276_v10 = vadd.f32 %v1268_v40, %v1247_v41  ;;  %v1124_v53 = vmul.f32 %v2157_v6, %v1112_v5 }
 0x149   : > { %1681 = vmatprep.mubr.msk.f32.mxu1 %vm277_vm1, %v1274_v30  ;;  %v1275_v48 = vadd.f32 %v1267_v31, %v1246_v45  ;;  %v1152_v54 = vmul.f32 %v2167_v12, %v1140_v56  ;;  %v1277_v59 = vadd.f32 %v1269_v49, %v1248_v1  ;;  %v1180_v7 = vmul.f32 %v2274_v44, %v1168_v61  ;;  %v1575_v44 = vld [vmem:[%s2564_s6] ss:$0 sm:$0xff] }
 0x14a   : > { %v1076_v51 = vadd.f32 %v1068_v57, %v1048_v38  ;;  %v1241_v62 = vadd.f32 %v2409_v32, %v1228_v47  ;;  %v1208_v19 = vmul.f32 %v2298_v20, %v1196_v63 }
 0x14c   : > { %1682 = vmatmul.mubr.msk.f32.gmra.mrb[14].mxu1 %vm277_vm1, %v1275_v48  ;;  %v1104_v35 = vadd.f32 %v1096_v21, %v1076_v51  ;;  %v1258_v58 = vmin.f32 %v1241_v62, 0.0  ;;  %v1249_v2 = vmax.f32 %v1241_v62, 0.0 }
 0x14d   : > { %1684 = vmatprep.mubr.msk.f32.mxu1 %vm277_vm1, %v1276_v10 }
 0x14e   : > { %v1132_v0 = vadd.f32 %v1124_v53, %v1104_v35  ;;  %v1270_v16 = vmul.f32 %v2424_v37, %v1258_v58 }
 0x150   : > { %1685 = vmatmul.mubr.msk.f32.gmra.mrb[16].mxu1 %vm277_vm1, %v1277_v59  ;;  %v1160_v22 = vadd.f32 %v1152_v54, %v1132_v0  ;;  %v1278_v6 = vadd.f32 %v1270_v16, %v1249_v2 }
 0x152   : > { %v1188_v36 = vadd.f32 %v1180_v7, %v1160_v22  ;;  %1687 = vmatprep.mubr.msk.f32.mxu1 %vm277_vm1, %v1278_v6 }
 0x154   : > { %v1216_v12 = vadd.f32 %v1208_v19, %v1188_v36 }
 0x156   : > { %v1229_v43 = vmul.f32 %v2399_v60, %v1216_v12  ;;  %v1576_v60 = vld [vmem:[%s2564_s6 + $0x1] ss:$0 sm:$0xff] }
 0x158   : > { %v1242_v3 = vadd.f32 %v2409_v32, %v1229_v43 }
 0x15a   : > { %v1259_v17 = vmin.f32 %v1242_v3, 0.0  ;;  %v1250_v26 = vmax.f32 %v1242_v3, 0.0 }
 0x15c   : > { %v1271_v11 = vmul.f32 %v2424_v37, %v1259_v17 }
 0x15e   : > { %v1279_v55 = vadd.f32 %v1271_v11, %v1250_v26 }
 0x160   : > { %1688 = vmatmul.mubr.msk.f32.gmra.mrb[18].mxu1 %vm277_vm1, %v1279_v55 }
 0x21b   : > { %v1680_v20 = vpop.f32.mrb[12].mxu1 }
 0x21c   : > { %v1416_v32 = vmul.f32 %v1680_v20, %v1575_v44  ;;  %v1371_v15 = vpop.f32.mrb[13].mxu1 }
 0x21d   : > { %v1415_v24 = vmul.f32 %v1575_v44, %v1371_v15 }
 0x21e   : > { %v1429_v52 = vadd.f32 %v1576_v60, %v1416_v32 }
 0x21f   : > { %v1428_v37 = vadd.f32 %v1576_v60, %v1415_v24  ;;  %v1683_v8 = vpop.f32.mrb[14].mxu1 }
 0x220   : > { %1437 = vst.msk [vmem:[%s271_s16 + $0x8] sm:$0xff] %vm277_vm1, %v1429_v52  ;;  %v1418_v25 = vmul.f32 %v1683_v8, %v1575_v44  ;;  %v1381_v28 = vpop.f32.mrb[15].mxu1 }
 0x221   : > { %1436 = vst.msk [vmem:[%s271_s16] sm:$0xff] %vm277_vm1, %v1428_v37  ;;  %v1417_v29 = vmul.f32 %v1575_v44, %v1381_v28 }
 0x222   : > { %v1431_v42 = vadd.f32 %v1576_v60, %v1418_v25 }
 0x223   : > { %v1430_v50 = vadd.f32 %v1576_v60, %v1417_v29  ;;  %v1686_v18 = vpop.f32.mrb[16].mxu1 }
 0x224   : > { %1439 = vst.msk [vmem:[%s271_s16 + $0x18] sm:$0xff] %vm277_vm1, %v1431_v42  ;;  %v1420_v27 = vmul.f32 %v1686_v18, %v1575_v44  ;;  %v1391_v30 = vpop.f32.mrb[17].mxu1 }
 0x225   : > { %1438 = vst.msk [vmem:[%s271_s16 + $0x10] sm:$0xff] %vm277_vm1, %v1430_v50  ;;  %v1419_v33 = vmul.f32 %v1575_v44, %v1391_v30 }
 0x226   : > { %v1433_v39 = vadd.f32 %v1576_v60, %v1420_v27 }
 0x227   : > { %v1432_v23 = vadd.f32 %v1576_v60, %v1419_v33 }
 0x228   : > { %1441 = vst.msk [vmem:[%s271_s16 + $0x28] sm:$0xff] %vm277_vm1, %v1433_v39 }
 0x229   : > { %1440 = vst.msk [vmem:[%s271_s16 + $0x20] sm:$0xff] %vm277_vm1, %v1432_v23 }
 0x233   : > { %v1689_v9 = vpop.f32.mrb[18].mxu1 }
 0x234   : > { %v1422_v45 = vmul.f32 %v1689_v9, %v1575_v44  ;;  %v1401_v14 = vpop.f32.mrb[19].mxu1 }
 0x235   : > { %v1421_v34 = vmul.f32 %v1575_v44, %v1401_v14 }
 0x236   : > { %v1435_v31 = vadd.f32 %v1576_v60, %v1422_v45 }
 0x237   : > { %v1434_v40 = vadd.f32 %v1576_v60, %v1421_v34 }
 0x238   : > { %1443 = vst.msk [vmem:[%s271_s16 + $0x38] sm:$0xff] %vm277_vm1, %v1435_v31 }
 0x239   : > { %1442 = vst.msk [vmem:[%s271_s16 + $0x30] sm:$0xff] %vm277_vm1, %v1434_v40 }
 0x23a   : > { %1747 = shalt.err (!%p1744_p3)
}
 0x23b   : > { %s1748_s29 = scalar_lea.hbm %s2509_s21, 1024  ;;  %s1752_s15 = scalar_lea.hbm %s2565_s7, 2048 }
 0x23c   : > { %p1749_p4 = scmp.ne.s32.totalorder %s2509_s21, %s1748_s29  ;;  %p1753_p9 = scmp.lt.u32.totalorder %s2509_s21, %s2565_s7 }
 0x23d   : > { %p1754_p10 = scmp.lt.u32.totalorder %s1752_s15, %s1748_s29  ;;  %p1756_p12 = scmp.lt.u32.totalorder %s1748_s29, %s2509_s21 }
 0x23e   : > { %p1750_p7 = pnand %p1749_p4, %p1880_p5 }
 0x23f   : > { %p1755_p11 = por %p1754_p10, %p1753_p9 }
 0x240   : > { %p1751_p8 = pneg %p1750_p7 }
 0x241   : > { %p1757_p13 = por %p1756_p12, %p1755_p11 }
 0x243   : > { %p1758_p0 = pnand %p1757_p13, %p1751_p8 }
 0x245   : > { %1761 = shalt.err (!%p1758_p0)
}
 0x246   : > { %s1800_s19 = smov 128   ;;  %s1801_s20 = smov 8  }
 0x247   : > { %1692 = dma.vmem_to_hbm [thread:$0]  (%p1880_p5), %s2511_s18, 1024, %s2509_s21, %s2517_s28, %s1800_s19, %s1800_s19, %s1801_s20  }
 0x248 PF: > { %p1698_p1 = scmp.ge.s32.totalorder %s1796_s27, 2  ;;  %s1473_s22 = sand.u32 1, %s1784_s24  }
 0x249   : > { %s1474_s23 = scalar_lea.sflag [#allocation4], %s1473_s22 }
 0x24a   : > { %p1695_p2 = pnand %p1698_p1, %p1884_p6 }
 0x24c   : > { %1779 = dma.done.wait (!%p1695_p2), %s1474_s23, 1024  }
 0x24d   : > { %1781 = vsyncadd (!%p1695_p2), %s1474_s23, 4294966272  ;;  %p17_p3 = scmp.ge.s32.totalorder %s1867_s30, 4   ;;  %s2568_s24 = smov %s1788_s25 }
 0x24e   : > { %s2569_s25 = smov %s1792_s26  ;;  %s2570_s26 = smov %s1878_s10 }
 0x24f   : > { %s2571_s27 = smov %s1867_s30  ;;  %19 = sbr.rel (!%p17_p3) target bundleno = 3 (0x3), region = 89 }
 0x256   :  { %1479 = vsyncpa [#allocation4], 1 }
 0x257   :  { %1481 = vsyncpa [#allocation4 + $0x1], 1 }

</bundles_post_ra>
